<compile_context>
chip_gen: v7x
topology: tpu7x:2x2x1
jax: 0.10.0
libtpu: 0.0.40
codegen_flags: <defaults>
</compile_context>

<pallas_src>
import functools

import numpy as np
import jax
import jax.numpy as jnp
from jax import lax
from jax.experimental import pallas as pl
from jax.experimental.pallas import tpu as pltpu


def down_kernel(xp_ref, masks_ref, w1_ref, s1_ref, b1_ref, w2_ref, s2_ref, b2_ref,
                o_ref, *, W2):
    """Whole batch in one invocation.

    xp_ref   : (4, Cin, NP)      the four 2x2-pool phases, NP = N*H2*W2 on lanes
    masks_ref: (9, 1, NP)        0/1 border-validity mask per 3x3 tap
    w*_ref   : (9, Cout', Cin')  per-tap conv weights, tap k = (dy+1)*3 + (dx+1)
    s*/b*    : (Cout', 1)        folded eval-mode BN scale / shift
    o_ref    : (Cout, NP)        lane-dense output slab
    """
    # ---- 2x2 max pool, stride 2: elementwise max of the four phase slabs ----
    pooled = jnp.max(xp_ref[...], axis=0)          # (Cin, NP)
    masks = masks_ref[...]                         # (9, 1, NP)

    def conv3x3(act, w_taps):
        # act: (C, NP); w_taps: (9, C', C). Direct conv = sum of 9 shifted GEMMs.
        acc = None
        k = 0
        for dy in (-1, 0, 1):
            for dx in (-1, 0, 1):
                off = dy * W2 + dx
                # result[l] = act[(l + off) mod NP]; wrapped values are masked to 0.
                shifted = act if off == 0 else jnp.roll(act, -off, axis=1)
                tap = shifted * masks[k]           # (C, NP), zero-pad via mask
                contrib = jnp.dot(w_taps[k], tap,
                                  preferred_element_type=jnp.float32,
                                  precision=lax.Precision.HIGHEST)
                acc = contrib if acc is None else acc + contrib
                k += 1
        return acc                                  # (C', NP) f32

    # conv1 + fused (eval-mode) BN + ReLU
    h1 = jnp.maximum(conv3x3(pooled, w1_ref[...]) * s1_ref[...] + b1_ref[...], 0.0)
    # conv2 + fused (eval-mode) BN + ReLU
    h2 = jnp.maximum(conv3x3(h1, w2_ref[...]) * s2_ref[...] + b2_ref[...], 0.0)

    o_ref[...] = h2.astype(o_ref.dtype)             # (Cout, NP): unmasked lane-dense store


@jax.jit
def down_forward(x_nchw, w1_oihw, scale1, shift1, w2_oihw, scale2, shift2):
    """Pallas implementation of Down.forward. Input/output are NCHW (PyTorch)."""
    N, Cin, H, W = x_nchw.shape
    H2, W2 = H // 2, W // 2
    NP = N * H2 * W2
    Cmid = w1_oihw.shape[0]
    Cout = w2_oihw.shape[0]

    x = x_nchw.astype(jnp.float32)

    # Layout plumbing: four 2x2-pool phases, each a (Cin, N*H2*W2) slab with
    # batch*spatial packed onto the 128-wide lane axis.
    phases = [
        jnp.transpose(x[:, :, py:2 * H2:2, px:2 * W2:2], (1, 0, 2, 3)).reshape(Cin, NP)
        for py in (0, 1) for px in (0, 1)
    ]
    xp = jnp.stack(phases, axis=0)                               # (4, Cin, NP)

    # Border-validity masks for the 9 conv taps (pure shape-derived constants,
    # built host-side so the kernel never needs vector int div/mod).
    l = np.arange(NP)
    xc = l % W2
    yc = (l // W2) % H2
    masks_np = np.stack([((yc + dy >= 0) & (yc + dy < H2) &
                          (xc + dx >= 0) & (xc + dx < W2))
                         for dy in (-1, 0, 1) for dx in (-1, 0, 1)])
    masks = jnp.asarray(masks_np.astype(np.float32)).reshape(9, 1, NP)

    # Per-tap conv weights: (ky, kx, o, i) -> (9, Cout, Cin), tap k = ky*3 + kx.
    w1_t = jnp.transpose(w1_oihw.astype(jnp.float32), (2, 3, 0, 1)).reshape(9, Cmid, Cin)
    w2_t = jnp.transpose(w2_oihw.astype(jnp.float32), (2, 3, 0, 1)).reshape(9, Cout, Cmid)

    s1 = scale1.reshape(Cmid, 1).astype(jnp.float32)
    b1 = shift1.reshape(Cmid, 1).astype(jnp.float32)
    s2 = scale2.reshape(Cout, 1).astype(jnp.float32)
    b2 = shift2.reshape(Cout, 1).astype(jnp.float32)

    kernel = functools.partial(down_kernel, W2=W2)

    out_flat = pl.pallas_call(
        kernel,
        out_shape=jax.ShapeDtypeStruct((Cout, NP), jnp.float32),
        grid=(1,),
        in_specs=[
            pl.BlockSpec((4, Cin, NP), lambda i: (0, 0, 0)),
            pl.BlockSpec((9, 1, NP), lambda i: (0, 0, 0)),
            pl.BlockSpec((9, Cmid, Cin), lambda i: (0, 0, 0)),
            pl.BlockSpec((Cmid, 1), lambda i: (0, 0)),
            pl.BlockSpec((Cmid, 1), lambda i: (0, 0)),
            pl.BlockSpec((9, Cout, Cmid), lambda i: (0, 0, 0)),
            pl.BlockSpec((Cout, 1), lambda i: (0, 0)),
            pl.BlockSpec((Cout, 1), lambda i: (0, 0)),
        ],
        out_specs=pl.BlockSpec((Cout, NP), lambda i: (0, 0)),
        compiler_params=pltpu.CompilerParams(
            dimension_semantics=("arbitrary",)),
    )(xp, masks, w1_t, s1, b1, w2_t, s2, b2)

    out = out_flat.reshape(Cout, N, H2, W2)
    return jnp.transpose(out, (1, 0, 2, 3))                      # back to NCHW


# ---------- pure-JAX reference (same eval-mode BN semantics) ----------
def ref_forward(x_nchw, w1_oihw, bn1, w2_oihw, bn2, eps=1e-5):
    x = lax.reduce_window(x_nchw, -jnp.inf, lax.max,
                          (1, 1, 2, 2), (1, 1, 2, 2), "VALID")

    def conv_bn_relu(x, w, bn):
        g, be, m, v = bn
        y = lax.conv_general_dilated(
            x, w, window_strides=(1, 1), padding=((1, 1), (1, 1)),
            dimension_numbers=("NCHW", "OIHW", "NCHW"),
            precision=lax.Precision.HIGHEST)
        y = (y - m[None, :, None, None]) / jnp.sqrt(v[None, :, None, None] + eps)
        y = y * g[None, :, None, None] + be[None, :, None, None]
        return jnp.maximum(y, 0.0)

    x = conv_bn_relu(x, w1_oihw, bn1)
    x = conv_bn_relu(x, w2_oihw, bn2)
    return x


if __name__ == "__main__":
    # Small shapes implied by the module: Down(in_channels=4, out_channels=8)
    N, Cin, H, W = 2, 4, 16, 16
    Cmid = Cout = 8
    eps = 1e-5

    key = jax.random.PRNGKey(0)
    ks = jax.random.split(key, 11)

    x = jax.random.normal(ks[0], (N, Cin, H, W), jnp.float32)

    # Conv weights (PyTorch OIHW), deterministic init
    w1_oihw = 0.2 * jax.random.normal(ks[1], (Cmid, Cin, 3, 3), jnp.float32)
    w2_oihw = 0.2 * jax.random.normal(ks[2], (Cout, Cmid, 3, 3), jnp.float32)

    # BatchNorm params / running stats, deterministic init
    g1 = 1.0 + 0.1 * jax.random.normal(ks[3], (Cmid,), jnp.float32)
    be1 = 0.1 * jax.random.normal(ks[4], (Cmid,), jnp.float32)
    m1 = 0.1 * jax.random.normal(ks[5], (Cmid,), jnp.float32)
    v1 = 1.0 + 0.1 * jax.random.uniform(ks[6], (Cmid,), jnp.float32)
    g2 = 1.0 + 0.1 * jax.random.normal(ks[7], (Cout,), jnp.float32)
    be2 = 0.1 * jax.random.normal(ks[8], (Cout,), jnp.float32)
    m2 = 0.1 * jax.random.normal(ks[9], (Cout,), jnp.float32)
    v2 = 1.0 + 0.1 * jax.random.uniform(ks[10], (Cout,), jnp.float32)

    # Fold eval-mode BN into per-channel scale/shift for the kernel
    scale1 = g1 / jnp.sqrt(v1 + eps)
    shift1 = be1 - m1 * scale1
    scale2 = g2 / jnp.sqrt(v2 + eps)
    shift2 = be2 - m2 * scale2

    out = down_forward(x, w1_oihw, scale1, shift1, w2_oihw, scale2, shift2)
    out = jax.block_until_ready(out)

    ref = ref_forward(x, w1_oihw, (g1, be1, m1, v1), w2_oihw, (g2, be2, m2, v2), eps)
    ref = jax.block_until_ready(ref)

    assert out.shape == (N, Cout, H // 2, W // 2), out.shape
    np.testing.assert_allclose(np.asarray(out), np.asarray(ref), rtol=1e-4, atol=1e-4)

    print("KERNEL_OK")
</pallas_src>

<mosaic_0001>
module attributes {stable_mosaic.version = 11 : i64} {
  func.func @down_kernel(%arg0: i32, %arg1: memref<4x4x128xf32, #tpu.memory_space<vmem>>, %arg2: memref<9x1x128xf32, #tpu.memory_space<vmem>>, %arg3: memref<9x8x4xf32, #tpu.memory_space<vmem>>, %arg4: memref<8x1xf32, #tpu.memory_space<vmem>>, %arg5: memref<8x1xf32, #tpu.memory_space<vmem>>, %arg6: memref<9x8x8xf32, #tpu.memory_space<vmem>>, %arg7: memref<8x1xf32, #tpu.memory_space<vmem>>, %arg8: memref<8x1xf32, #tpu.memory_space<vmem>>, %arg9: memref<8x128xf32, #tpu.memory_space<vmem>>) attributes {dimension_semantics = [#tpu.dimension_semantics<arbitrary>], iteration_bounds = array<i64: 1>, scalar_prefetch = 0 : i64, scratch_operands = 0 : i64, tpu.core_type = #tpu.core_type<tc>, window_params = [{pipeline_mode = #tpu.pipeline_mode<synchronous>, transform_indices = @transform_0, window_bounds = array<i64: 4, 4, 128>}, {pipeline_mode = #tpu.pipeline_mode<synchronous>, transform_indices = @transform_1, window_bounds = array<i64: 9, 1, 128>}, {pipeline_mode = #tpu.pipeline_mode<synchronous>, transform_indices = @transform_2, window_bounds = array<i64: 9, 8, 4>}, {pipeline_mode = #tpu.pipeline_mode<synchronous>, transform_indices = @transform_3, window_bounds = array<i64: 8, 1>}, {pipeline_mode = #tpu.pipeline_mode<synchronous>, transform_indices = @transform_4, window_bounds = array<i64: 8, 1>}, {pipeline_mode = #tpu.pipeline_mode<synchronous>, transform_indices = @transform_5, window_bounds = array<i64: 9, 8, 8>}, {pipeline_mode = #tpu.pipeline_mode<synchronous>, transform_indices = @transform_6, window_bounds = array<i64: 8, 1>}, {pipeline_mode = #tpu.pipeline_mode<synchronous>, transform_indices = @transform_7, window_bounds = array<i64: 8, 1>}, {pipeline_mode = #tpu.pipeline_mode<synchronous>, transform_indices = @transform_8, window_bounds = array<i64: 8, 128>}]} {
    %c0 = arith.constant 0 : index
    %c0_0 = arith.constant 0 : index
    %c0_1 = arith.constant 0 : index
    %0 = vector.load %arg1[%c0, %c0_0, %c0_1] : memref<4x4x128xf32, #tpu.memory_space<vmem>>, vector<4x4x128xf32>
    %cst = arith.constant dense<0xFF800000> : vector<4x128xf32>
    %1 = vector.multi_reduction <maximumf>, %0, %cst [0] : vector<4x4x128xf32> to vector<4x128xf32>
    %c0_2 = arith.constant 0 : index
    %c0_3 = arith.constant 0 : index
    %c0_4 = arith.constant 0 : index
    %2 = vector.load %arg2[%c0_2, %c0_3, %c0_4] : memref<9x1x128xf32, #tpu.memory_space<vmem>>, vector<9x1x128xf32>
    %c0_5 = arith.constant 0 : index
    %c0_6 = arith.constant 0 : index
    %c0_7 = arith.constant 0 : index
    %3 = vector.load %arg3[%c0_5, %c0_6, %c0_7] : memref<9x8x4xf32, #tpu.memory_space<vmem>>, vector<9x8x4xf32>
    %4 = vector.extract_strided_slice %1 {offsets = [0, 119], sizes = [4, 9], strides = [1, 1]} : vector<4x128xf32> to vector<4x9xf32>
    %5 = vector.extract_strided_slice %1 {offsets = [0, 0], sizes = [4, 119], strides = [1, 1]} : vector<4x128xf32> to vector<4x119xf32>
    %6 = tpu.concatenate %4, %5 in 1 : vector<4x9xf32>, vector<4x119xf32> -> vector<4x128xf32>
    %7 = vector.extract_strided_slice %2 {offsets = [0, 0, 0], sizes = [1, 1, 128], strides = [1, 1, 1]} : vector<9x1x128xf32> to vector<1x1x128xf32>
    %8 = vector.shape_cast %7 : vector<1x1x128xf32> to vector<1x128xf32>
    %9 = vector.broadcast %8 : vector<1x128xf32> to vector<4x128xf32>
    %10 = arith.mulf %6, %9 : vector<4x128xf32>
    %11 = vector.extract_strided_slice %3 {offsets = [0, 0, 0], sizes = [1, 8, 4], strides = [1, 1, 1]} : vector<9x8x4xf32> to vector<1x8x4xf32>
    %12 = vector.shape_cast %11 : vector<1x8x4xf32> to vector<8x4xf32>
    %cst_8 = arith.constant dense<0.000000e+00> : vector<8x128xf32>
    %13 = tpu.matmul %12, %10, %cst_8 {dimension_numbers = #tpu.dot_dimension_numbers<[1], [0], [0], [1], [0, 0, 1, 1], [], []>, precision = #tpu.contract_precision<fp32>} : vector<8x4xf32>, vector<4x128xf32>, vector<8x128xf32> -> vector<8x128xf32>
    %14 = vector.extract_strided_slice %1 {offsets = [0, 120], sizes = [4, 8], strides = [1, 1]} : vector<4x128xf32> to vector<4x8xf32>
    %15 = vector.extract_strided_slice %1 {offsets = [0, 0], sizes = [4, 120], strides = [1, 1]} : vector<4x128xf32> to vector<4x120xf32>
    %16 = tpu.concatenate %14, %15 in 1 : vector<4x8xf32>, vector<4x120xf32> -> vector<4x128xf32>
    %17 = vector.extract_strided_slice %2 {offsets = [1, 0, 0], sizes = [1, 1, 128], strides = [1, 1, 1]} : vector<9x1x128xf32> to vector<1x1x128xf32>
    %18 = vector.shape_cast %17 : vector<1x1x128xf32> to vector<1x128xf32>
    %19 = vector.broadcast %18 : vector<1x128xf32> to vector<4x128xf32>
    %20 = arith.mulf %16, %19 : vector<4x128xf32>
    %21 = vector.extract_strided_slice %3 {offsets = [1, 0, 0], sizes = [1, 8, 4], strides = [1, 1, 1]} : vector<9x8x4xf32> to vector<1x8x4xf32>
    %22 = vector.shape_cast %21 : vector<1x8x4xf32> to vector<8x4xf32>
    %cst_9 = arith.constant dense<0.000000e+00> : vector<8x128xf32>
    %23 = tpu.matmul %22, %20, %cst_9 {dimension_numbers = #tpu.dot_dimension_numbers<[1], [0], [0], [1], [0, 0, 1, 1], [], []>, precision = #tpu.contract_precision<fp32>} : vector<8x4xf32>, vector<4x128xf32>, vector<8x128xf32> -> vector<8x128xf32>
    %24 = arith.addf %13, %23 : vector<8x128xf32>
    %25 = vector.extract_strided_slice %1 {offsets = [0, 121], sizes = [4, 7], strides = [1, 1]} : vector<4x128xf32> to vector<4x7xf32>
    %26 = vector.extract_strided_slice %1 {offsets = [0, 0], sizes = [4, 121], strides = [1, 1]} : vector<4x128xf32> to vector<4x121xf32>
    %27 = tpu.concatenate %25, %26 in 1 : vector<4x7xf32>, vector<4x121xf32> -> vector<4x128xf32>
    %28 = vector.extract_strided_slice %2 {offsets = [2, 0, 0], sizes = [1, 1, 128], strides = [1, 1, 1]} : vector<9x1x128xf32> to vector<1x1x128xf32>
    %29 = vector.shape_cast %28 : vector<1x1x128xf32> to vector<1x128xf32>
    %30 = vector.broadcast %29 : vector<1x128xf32> to vector<4x128xf32>
    %31 = arith.mulf %27, %30 : vector<4x128xf32>
    %32 = vector.extract_strided_slice %3 {offsets = [2, 0, 0], sizes = [1, 8, 4], strides = [1, 1, 1]} : vector<9x8x4xf32> to vector<1x8x4xf32>
    %33 = vector.shape_cast %32 : vector<1x8x4xf32> to vector<8x4xf32>
    %cst_10 = arith.constant dense<0.000000e+00> : vector<8x128xf32>
    %34 = tpu.matmul %33, %31, %cst_10 {dimension_numbers = #tpu.dot_dimension_numbers<[1], [0], [0], [1], [0, 0, 1, 1], [], []>, precision = #tpu.contract_precision<fp32>} : vector<8x4xf32>, vector<4x128xf32>, vector<8x128xf32> -> vector<8x128xf32>
    %35 = arith.addf %24, %34 : vector<8x128xf32>
    %36 = vector.extract_strided_slice %1 {offsets = [0, 127], sizes = [4, 1], strides = [1, 1]} : vector<4x128xf32> to vector<4x1xf32>
    %37 = vector.extract_strided_slice %1 {offsets = [0, 0], sizes = [4, 127], strides = [1, 1]} : vector<4x128xf32> to vector<4x127xf32>
    %38 = tpu.concatenate %36, %37 in 1 : vector<4x1xf32>, vector<4x127xf32> -> vector<4x128xf32>
    %39 = vector.extract_strided_slice %2 {offsets = [3, 0, 0], sizes = [1, 1, 128], strides = [1, 1, 1]} : vector<9x1x128xf32> to vector<1x1x128xf32>
    %40 = vector.shape_cast %39 : vector<1x1x128xf32> to vector<1x128xf32>
    %41 = vector.broadcast %40 : vector<1x128xf32> to vector<4x128xf32>
    %42 = arith.mulf %38, %41 : vector<4x128xf32>
    %43 = vector.extract_strided_slice %3 {offsets = [3, 0, 0], sizes = [1, 8, 4], strides = [1, 1, 1]} : vector<9x8x4xf32> to vector<1x8x4xf32>
    %44 = vector.shape_cast %43 : vector<1x8x4xf32> to vector<8x4xf32>
    %cst_11 = arith.constant dense<0.000000e+00> : vector<8x128xf32>
    %45 = tpu.matmul %44, %42, %cst_11 {dimension_numbers = #tpu.dot_dimension_numbers<[1], [0], [0], [1], [0, 0, 1, 1], [], []>, precision = #tpu.contract_precision<fp32>} : vector<8x4xf32>, vector<4x128xf32>, vector<8x128xf32> -> vector<8x128xf32>
    %46 = arith.addf %35, %45 : vector<8x128xf32>
    %47 = vector.extract_strided_slice %2 {offsets = [4, 0, 0], sizes = [1, 1, 128], strides = [1, 1, 1]} : vector<9x1x128xf32> to vector<1x1x128xf32>
    %48 = vector.shape_cast %47 : vector<1x1x128xf32> to vector<1x128xf32>
    %49 = vector.broadcast %48 : vector<1x128xf32> to vector<4x128xf32>
    %50 = arith.mulf %1, %49 : vector<4x128xf32>
    %51 = vector.extract_strided_slice %3 {offsets = [4, 0, 0], sizes = [1, 8, 4], strides = [1, 1, 1]} : vector<9x8x4xf32> to vector<1x8x4xf32>
    %52 = vector.shape_cast %51 : vector<1x8x4xf32> to vector<8x4xf32>
    %cst_12 = arith.constant dense<0.000000e+00> : vector<8x128xf32>
    %53 = tpu.matmul %52, %50, %cst_12 {dimension_numbers = #tpu.dot_dimension_numbers<[1], [0], [0], [1], [0, 0, 1, 1], [], []>, precision = #tpu.contract_precision<fp32>} : vector<8x4xf32>, vector<4x128xf32>, vector<8x128xf32> -> vector<8x128xf32>
    %54 = arith.addf %46, %53 : vector<8x128xf32>
    %55 = vector.extract_strided_slice %1 {offsets = [0, 1], sizes = [4, 127], strides = [1, 1]} : vector<4x128xf32> to vector<4x127xf32>
    %56 = vector.extract_strided_slice %1 {offsets = [0, 0], sizes = [4, 1], strides = [1, 1]} : vector<4x128xf32> to vector<4x1xf32>
    %57 = tpu.concatenate %55, %56 in 1 : vector<4x127xf32>, vector<4x1xf32> -> vector<4x128xf32>
    %58 = vector.extract_strided_slice %2 {offsets = [5, 0, 0], sizes = [1, 1, 128], strides = [1, 1, 1]} : vector<9x1x128xf32> to vector<1x1x128xf32>
    %59 = vector.shape_cast %58 : vector<1x1x128xf32> to vector<1x128xf32>
    %60 = vector.broadcast %59 : vector<1x128xf32> to vector<4x128xf32>
    %61 = arith.mulf %57, %60 : vector<4x128xf32>
    %62 = vector.extract_strided_slice %3 {offsets = [5, 0, 0], sizes = [1, 8, 4], strides = [1, 1, 1]} : vector<9x8x4xf32> to vector<1x8x4xf32>
    %63 = vector.shape_cast %62 : vector<1x8x4xf32> to vector<8x4xf32>
    %cst_13 = arith.constant dense<0.000000e+00> : vector<8x128xf32>
    %64 = tpu.matmul %63, %61, %cst_13 {dimension_numbers = #tpu.dot_dimension_numbers<[1], [0], [0], [1], [0, 0, 1, 1], [], []>, precision = #tpu.contract_precision<fp32>} : vector<8x4xf32>, vector<4x128xf32>, vector<8x128xf32> -> vector<8x128xf32>
    %65 = arith.addf %54, %64 : vector<8x128xf32>
    %66 = vector.extract_strided_slice %1 {offsets = [0, 7], sizes = [4, 121], strides = [1, 1]} : vector<4x128xf32> to vector<4x121xf32>
    %67 = vector.extract_strided_slice %1 {offsets = [0, 0], sizes = [4, 7], strides = [1, 1]} : vector<4x128xf32> to vector<4x7xf32>
    %68 = tpu.concatenate %66, %67 in 1 : vector<4x121xf32>, vector<4x7xf32> -> vector<4x128xf32>
    %69 = vector.extract_strided_slice %2 {offsets = [6, 0, 0], sizes = [1, 1, 128], strides = [1, 1, 1]} : vector<9x1x128xf32> to vector<1x1x128xf32>
    %70 = vector.shape_cast %69 : vector<1x1x128xf32> to vector<1x128xf32>
    %71 = vector.broadcast %70 : vector<1x128xf32> to vector<4x128xf32>
    %72 = arith.mulf %68, %71 : vector<4x128xf32>
    %73 = vector.extract_strided_slice %3 {offsets = [6, 0, 0], sizes = [1, 8, 4], strides = [1, 1, 1]} : vector<9x8x4xf32> to vector<1x8x4xf32>
    %74 = vector.shape_cast %73 : vector<1x8x4xf32> to vector<8x4xf32>
    %cst_14 = arith.constant dense<0.000000e+00> : vector<8x128xf32>
    %75 = tpu.matmul %74, %72, %cst_14 {dimension_numbers = #tpu.dot_dimension_numbers<[1], [0], [0], [1], [0, 0, 1, 1], [], []>, precision = #tpu.contract_precision<fp32>} : vector<8x4xf32>, vector<4x128xf32>, vector<8x128xf32> -> vector<8x128xf32>
    %76 = arith.addf %65, %75 : vector<8x128xf32>
    %77 = vector.extract_strided_slice %1 {offsets = [0, 8], sizes = [4, 120], strides = [1, 1]} : vector<4x128xf32> to vector<4x120xf32>
    %78 = vector.extract_strided_slice %1 {offsets = [0, 0], sizes = [4, 8], strides = [1, 1]} : vector<4x128xf32> to vector<4x8xf32>
    %79 = tpu.concatenate %77, %78 in 1 : vector<4x120xf32>, vector<4x8xf32> -> vector<4x128xf32>
    %80 = vector.extract_strided_slice %2 {offsets = [7, 0, 0], sizes = [1, 1, 128], strides = [1, 1, 1]} : vector<9x1x128xf32> to vector<1x1x128xf32>
    %81 = vector.shape_cast %80 : vector<1x1x128xf32> to vector<1x128xf32>
    %82 = vector.broadcast %81 : vector<1x128xf32> to vector<4x128xf32>
    %83 = arith.mulf %79, %82 : vector<4x128xf32>
    %84 = vector.extract_strided_slice %3 {offsets = [7, 0, 0], sizes = [1, 8, 4], strides = [1, 1, 1]} : vector<9x8x4xf32> to vector<1x8x4xf32>
    %85 = vector.shape_cast %84 : vector<1x8x4xf32> to vector<8x4xf32>
    %cst_15 = arith.constant dense<0.000000e+00> : vector<8x128xf32>
    %86 = tpu.matmul %85, %83, %cst_15 {dimension_numbers = #tpu.dot_dimension_numbers<[1], [0], [0], [1], [0, 0, 1, 1], [], []>, precision = #tpu.contract_precision<fp32>} : vector<8x4xf32>, vector<4x128xf32>, vector<8x128xf32> -> vector<8x128xf32>
    %87 = arith.addf %76, %86 : vector<8x128xf32>
    %88 = vector.extract_strided_slice %1 {offsets = [0, 9], sizes = [4, 119], strides = [1, 1]} : vector<4x128xf32> to vector<4x119xf32>
    %89 = vector.extract_strided_slice %1 {offsets = [0, 0], sizes = [4, 9], strides = [1, 1]} : vector<4x128xf32> to vector<4x9xf32>
    %90 = tpu.concatenate %88, %89 in 1 : vector<4x119xf32>, vector<4x9xf32> -> vector<4x128xf32>
    %91 = vector.extract_strided_slice %2 {offsets = [8, 0, 0], sizes = [1, 1, 128], strides = [1, 1, 1]} : vector<9x1x128xf32> to vector<1x1x128xf32>
    %92 = vector.shape_cast %91 : vector<1x1x128xf32> to vector<1x128xf32>
    %93 = vector.broadcast %92 : vector<1x128xf32> to vector<4x128xf32>
    %94 = arith.mulf %90, %93 : vector<4x128xf32>
    %95 = vector.extract_strided_slice %3 {offsets = [8, 0, 0], sizes = [1, 8, 4], strides = [1, 1, 1]} : vector<9x8x4xf32> to vector<1x8x4xf32>
    %96 = vector.shape_cast %95 : vector<1x8x4xf32> to vector<8x4xf32>
    %cst_16 = arith.constant dense<0.000000e+00> : vector<8x128xf32>
    %97 = tpu.matmul %96, %94, %cst_16 {dimension_numbers = #tpu.dot_dimension_numbers<[1], [0], [0], [1], [0, 0, 1, 1], [], []>, precision = #tpu.contract_precision<fp32>} : vector<8x4xf32>, vector<4x128xf32>, vector<8x128xf32> -> vector<8x128xf32>
    %98 = arith.addf %87, %97 : vector<8x128xf32>
    %c0_17 = arith.constant 0 : index
    %c0_18 = arith.constant 0 : index
    %99 = vector.load %arg4[%c0_17, %c0_18] : memref<8x1xf32, #tpu.memory_space<vmem>>, vector<8x1xf32>
    %100 = vector.broadcast %99 : vector<8x1xf32> to vector<8x128xf32>
    %101 = arith.mulf %98, %100 : vector<8x128xf32>
    %c0_19 = arith.constant 0 : index
    %c0_20 = arith.constant 0 : index
    %102 = vector.load %arg5[%c0_19, %c0_20] : memref<8x1xf32, #tpu.memory_space<vmem>>, vector<8x1xf32>
    %103 = vector.broadcast %102 : vector<8x1xf32> to vector<8x128xf32>
    %104 = arith.addf %101, %103 : vector<8x128xf32>
    %cst_21 = arith.constant 0.000000e+00 : f32
    %105 = vector.broadcast %cst_21 : f32 to vector<8x128xf32>
    %106 = arith.maximumf %104, %105 : vector<8x128xf32>
    %c0_22 = arith.constant 0 : index
    %c0_23 = arith.constant 0 : index
    %c0_24 = arith.constant 0 : index
    %107 = vector.load %arg6[%c0_22, %c0_23, %c0_24] : memref<9x8x8xf32, #tpu.memory_space<vmem>>, vector<9x8x8xf32>
    %108 = vector.extract_strided_slice %106 {offsets = [0, 119], sizes = [8, 9], strides = [1, 1]} : vector<8x128xf32> to vector<8x9xf32>
    %109 = vector.extract_strided_slice %106 {offsets = [0, 0], sizes = [8, 119], strides = [1, 1]} : vector<8x128xf32> to vector<8x119xf32>
    %110 = tpu.concatenate %108, %109 in 1 : vector<8x9xf32>, vector<8x119xf32> -> vector<8x128xf32>
    %111 = vector.extract_strided_slice %2 {offsets = [0, 0, 0], sizes = [1, 1, 128], strides = [1, 1, 1]} : vector<9x1x128xf32> to vector<1x1x128xf32>
    %112 = vector.shape_cast %111 : vector<1x1x128xf32> to vector<1x128xf32>
    %113 = vector.broadcast %112 : vector<1x128xf32> to vector<8x128xf32>
    %114 = arith.mulf %110, %113 : vector<8x128xf32>
    %115 = vector.extract_strided_slice %107 {offsets = [0, 0, 0], sizes = [1, 8, 8], strides = [1, 1, 1]} : vector<9x8x8xf32> to vector<1x8x8xf32>
    %116 = vector.shape_cast %115 : vector<1x8x8xf32> to vector<8x8xf32>
    %cst_25 = arith.constant dense<0.000000e+00> : vector<8x128xf32>
    %117 = tpu.matmul %116, %114, %cst_25 {dimension_numbers = #tpu.dot_dimension_numbers<[1], [0], [0], [1], [0, 0, 1, 1], [], []>, precision = #tpu.contract_precision<fp32>} : vector<8x8xf32>, vector<8x128xf32>, vector<8x128xf32> -> vector<8x128xf32>
    %118 = vector.extract_strided_slice %106 {offsets = [0, 120], sizes = [8, 8], strides = [1, 1]} : vector<8x128xf32> to vector<8x8xf32>
    %119 = vector.extract_strided_slice %106 {offsets = [0, 0], sizes = [8, 120], strides = [1, 1]} : vector<8x128xf32> to vector<8x120xf32>
    %120 = tpu.concatenate %118, %119 in 1 : vector<8x8xf32>, vector<8x120xf32> -> vector<8x128xf32>
    %121 = vector.extract_strided_slice %2 {offsets = [1, 0, 0], sizes = [1, 1, 128], strides = [1, 1, 1]} : vector<9x1x128xf32> to vector<1x1x128xf32>
    %122 = vector.shape_cast %121 : vector<1x1x128xf32> to vector<1x128xf32>
    %123 = vector.broadcast %122 : vector<1x128xf32> to vector<8x128xf32>
    %124 = arith.mulf %120, %123 : vector<8x128xf32>
    %125 = vector.extract_strided_slice %107 {offsets = [1, 0, 0], sizes = [1, 8, 8], strides = [1, 1, 1]} : vector<9x8x8xf32> to vector<1x8x8xf32>
    %126 = vector.shape_cast %125 : vector<1x8x8xf32> to vector<8x8xf32>
    %cst_26 = arith.constant dense<0.000000e+00> : vector<8x128xf32>
    %127 = tpu.matmul %126, %124, %cst_26 {dimension_numbers = #tpu.dot_dimension_numbers<[1], [0], [0], [1], [0, 0, 1, 1], [], []>, precision = #tpu.contract_precision<fp32>} : vector<8x8xf32>, vector<8x128xf32>, vector<8x128xf32> -> vector<8x128xf32>
    %128 = arith.addf %117, %127 : vector<8x128xf32>
    %129 = vector.extract_strided_slice %106 {offsets = [0, 121], sizes = [8, 7], strides = [1, 1]} : vector<8x128xf32> to vector<8x7xf32>
    %130 = vector.extract_strided_slice %106 {offsets = [0, 0], sizes = [8, 121], strides = [1, 1]} : vector<8x128xf32> to vector<8x121xf32>
    %131 = tpu.concatenate %129, %130 in 1 : vector<8x7xf32>, vector<8x121xf32> -> vector<8x128xf32>
    %132 = vector.extract_strided_slice %2 {offsets = [2, 0, 0], sizes = [1, 1, 128], strides = [1, 1, 1]} : vector<9x1x128xf32> to vector<1x1x128xf32>
    %133 = vector.shape_cast %132 : vector<1x1x128xf32> to vector<1x128xf32>
    %134 = vector.broadcast %133 : vector<1x128xf32> to vector<8x128xf32>
    %135 = arith.mulf %131, %134 : vector<8x128xf32>
    %136 = vector.extract_strided_slice %107 {offsets = [2, 0, 0], sizes = [1, 8, 8], strides = [1, 1, 1]} : vector<9x8x8xf32> to vector<1x8x8xf32>
    %137 = vector.shape_cast %136 : vector<1x8x8xf32> to vector<8x8xf32>
    %cst_27 = arith.constant dense<0.000000e+00> : vector<8x128xf32>
    %138 = tpu.matmul %137, %135, %cst_27 {dimension_numbers = #tpu.dot_dimension_numbers<[1], [0], [0], [1], [0, 0, 1, 1], [], []>, precision = #tpu.contract_precision<fp32>} : vector<8x8xf32>, vector<8x128xf32>, vector<8x128xf32> -> vector<8x128xf32>
    %139 = arith.addf %128, %138 : vector<8x128xf32>
    %140 = vector.extract_strided_slice %106 {offsets = [0, 127], sizes = [8, 1], strides = [1, 1]} : vector<8x128xf32> to vector<8x1xf32>
    %141 = vector.extract_strided_slice %106 {offsets = [0, 0], sizes = [8, 127], strides = [1, 1]} : vector<8x128xf32> to vector<8x127xf32>
    %142 = tpu.concatenate %140, %141 in 1 : vector<8x1xf32>, vector<8x127xf32> -> vector<8x128xf32>
    %143 = vector.extract_strided_slice %2 {offsets = [3, 0, 0], sizes = [1, 1, 128], strides = [1, 1, 1]} : vector<9x1x128xf32> to vector<1x1x128xf32>
    %144 = vector.shape_cast %143 : vector<1x1x128xf32> to vector<1x128xf32>
    %145 = vector.broadcast %144 : vector<1x128xf32> to vector<8x128xf32>
    %146 = arith.mulf %142, %145 : vector<8x128xf32>
    %147 = vector.extract_strided_slice %107 {offsets = [3, 0, 0], sizes = [1, 8, 8], strides = [1, 1, 1]} : vector<9x8x8xf32> to vector<1x8x8xf32>
    %148 = vector.shape_cast %147 : vector<1x8x8xf32> to vector<8x8xf32>
    %cst_28 = arith.constant dense<0.000000e+00> : vector<8x128xf32>
    %149 = tpu.matmul %148, %146, %cst_28 {dimension_numbers = #tpu.dot_dimension_numbers<[1], [0], [0], [1], [0, 0, 1, 1], [], []>, precision = #tpu.contract_precision<fp32>} : vector<8x8xf32>, vector<8x128xf32>, vector<8x128xf32> -> vector<8x128xf32>
    %150 = arith.addf %139, %149 : vector<8x128xf32>
    %151 = vector.extract_strided_slice %2 {offsets = [4, 0, 0], sizes = [1, 1, 128], strides = [1, 1, 1]} : vector<9x1x128xf32> to vector<1x1x128xf32>
    %152 = vector.shape_cast %151 : vector<1x1x128xf32> to vector<1x128xf32>
    %153 = vector.broadcast %152 : vector<1x128xf32> to vector<8x128xf32>
    %154 = arith.mulf %106, %153 : vector<8x128xf32>
    %155 = vector.extract_strided_slice %107 {offsets = [4, 0, 0], sizes = [1, 8, 8], strides = [1, 1, 1]} : vector<9x8x8xf32> to vector<1x8x8xf32>
    %156 = vector.shape_cast %155 : vector<1x8x8xf32> to vector<8x8xf32>
    %cst_29 = arith.constant dense<0.000000e+00> : vector<8x128xf32>
    %157 = tpu.matmul %156, %154, %cst_29 {dimension_numbers = #tpu.dot_dimension_numbers<[1], [0], [0], [1], [0, 0, 1, 1], [], []>, precision = #tpu.contract_precision<fp32>} : vector<8x8xf32>, vector<8x128xf32>, vector<8x128xf32> -> vector<8x128xf32>
    %158 = arith.addf %150, %157 : vector<8x128xf32>
    %159 = vector.extract_strided_slice %106 {offsets = [0, 1], sizes = [8, 127], strides = [1, 1]} : vector<8x128xf32> to vector<8x127xf32>
    %160 = vector.extract_strided_slice %106 {offsets = [0, 0], sizes = [8, 1], strides = [1, 1]} : vector<8x128xf32> to vector<8x1xf32>
    %161 = tpu.concatenate %159, %160 in 1 : vector<8x127xf32>, vector<8x1xf32> -> vector<8x128xf32>
    %162 = vector.extract_strided_slice %2 {offsets = [5, 0, 0], sizes = [1, 1, 128], strides = [1, 1, 1]} : vector<9x1x128xf32> to vector<1x1x128xf32>
    %163 = vector.shape_cast %162 : vector<1x1x128xf32> to vector<1x128xf32>
    %164 = vector.broadcast %163 : vector<1x128xf32> to vector<8x128xf32>
    %165 = arith.mulf %161, %164 : vector<8x128xf32>
    %166 = vector.extract_strided_slice %107 {offsets = [5, 0, 0], sizes = [1, 8, 8], strides = [1, 1, 1]} : vector<9x8x8xf32> to vector<1x8x8xf32>
    %167 = vector.shape_cast %166 : vector<1x8x8xf32> to vector<8x8xf32>
    %cst_30 = arith.constant dense<0.000000e+00> : vector<8x128xf32>
    %168 = tpu.matmul %167, %165, %cst_30 {dimension_numbers = #tpu.dot_dimension_numbers<[1], [0], [0], [1], [0, 0, 1, 1], [], []>, precision = #tpu.contract_precision<fp32>} : vector<8x8xf32>, vector<8x128xf32>, vector<8x128xf32> -> vector<8x128xf32>
    %169 = arith.addf %158, %168 : vector<8x128xf32>
    %170 = vector.extract_strided_slice %106 {offsets = [0, 7], sizes = [8, 121], strides = [1, 1]} : vector<8x128xf32> to vector<8x121xf32>
    %171 = vector.extract_strided_slice %106 {offsets = [0, 0], sizes = [8, 7], strides = [1, 1]} : vector<8x128xf32> to vector<8x7xf32>
    %172 = tpu.concatenate %170, %171 in 1 : vector<8x121xf32>, vector<8x7xf32> -> vector<8x128xf32>
    %173 = vector.extract_strided_slice %2 {offsets = [6, 0, 0], sizes = [1, 1, 128], strides = [1, 1, 1]} : vector<9x1x128xf32> to vector<1x1x128xf32>
    %174 = vector.shape_cast %173 : vector<1x1x128xf32> to vector<1x128xf32>
    %175 = vector.broadcast %174 : vector<1x128xf32> to vector<8x128xf32>
    %176 = arith.mulf %172, %175 : vector<8x128xf32>
    %177 = vector.extract_strided_slice %107 {offsets = [6, 0, 0], sizes = [1, 8, 8], strides = [1, 1, 1]} : vector<9x8x8xf32> to vector<1x8x8xf32>
    %178 = vector.shape_cast %177 : vector<1x8x8xf32> to vector<8x8xf32>
    %cst_31 = arith.constant dense<0.000000e+00> : vector<8x128xf32>
    %179 = tpu.matmul %178, %176, %cst_31 {dimension_numbers = #tpu.dot_dimension_numbers<[1], [0], [0], [1], [0, 0, 1, 1], [], []>, precision = #tpu.contract_precision<fp32>} : vector<8x8xf32>, vector<8x128xf32>, vector<8x128xf32> -> vector<8x128xf32>
    %180 = arith.addf %169, %179 : vector<8x128xf32>
    %181 = vector.extract_strided_slice %106 {offsets = [0, 8], sizes = [8, 120], strides = [1, 1]} : vector<8x128xf32> to vector<8x120xf32>
    %182 = vector.extract_strided_slice %106 {offsets = [0, 0], sizes = [8, 8], strides = [1, 1]} : vector<8x128xf32> to vector<8x8xf32>
    %183 = tpu.concatenate %181, %182 in 1 : vector<8x120xf32>, vector<8x8xf32> -> vector<8x128xf32>
    %184 = vector.extract_strided_slice %2 {offsets = [7, 0, 0], sizes = [1, 1, 128], strides = [1, 1, 1]} : vector<9x1x128xf32> to vector<1x1x128xf32>
    %185 = vector.shape_cast %184 : vector<1x1x128xf32> to vector<1x128xf32>
    %186 = vector.broadcast %185 : vector<1x128xf32> to vector<8x128xf32>
    %187 = arith.mulf %183, %186 : vector<8x128xf32>
    %188 = vector.extract_strided_slice %107 {offsets = [7, 0, 0], sizes = [1, 8, 8], strides = [1, 1, 1]} : vector<9x8x8xf32> to vector<1x8x8xf32>
    %189 = vector.shape_cast %188 : vector<1x8x8xf32> to vector<8x8xf32>
    %cst_32 = arith.constant dense<0.000000e+00> : vector<8x128xf32>
    %190 = tpu.matmul %189, %187, %cst_32 {dimension_numbers = #tpu.dot_dimension_numbers<[1], [0], [0], [1], [0, 0, 1, 1], [], []>, precision = #tpu.contract_precision<fp32>} : vector<8x8xf32>, vector<8x128xf32>, vector<8x128xf32> -> vector<8x128xf32>
    %191 = arith.addf %180, %190 : vector<8x128xf32>
    %192 = vector.extract_strided_slice %106 {offsets = [0, 9], sizes = [8, 119], strides = [1, 1]} : vector<8x128xf32> to vector<8x119xf32>
    %193 = vector.extract_strided_slice %106 {offsets = [0, 0], sizes = [8, 9], strides = [1, 1]} : vector<8x128xf32> to vector<8x9xf32>
    %194 = tpu.concatenate %192, %193 in 1 : vector<8x119xf32>, vector<8x9xf32> -> vector<8x128xf32>
    %195 = vector.extract_strided_slice %2 {offsets = [8, 0, 0], sizes = [1, 1, 128], strides = [1, 1, 1]} : vector<9x1x128xf32> to vector<1x1x128xf32>
    %196 = vector.shape_cast %195 : vector<1x1x128xf32> to vector<1x128xf32>
    %197 = vector.broadcast %196 : vector<1x128xf32> to vector<8x128xf32>
    %198 = arith.mulf %194, %197 : vector<8x128xf32>
    %199 = vector.extract_strided_slice %107 {offsets = [8, 0, 0], sizes = [1, 8, 8], strides = [1, 1, 1]} : vector<9x8x8xf32> to vector<1x8x8xf32>
    %200 = vector.shape_cast %199 : vector<1x8x8xf32> to vector<8x8xf32>
    %cst_33 = arith.constant dense<0.000000e+00> : vector<8x128xf32>
    %201 = tpu.matmul %200, %198, %cst_33 {dimension_numbers = #tpu.dot_dimension_numbers<[1], [0], [0], [1], [0, 0, 1, 1], [], []>, precision = #tpu.contract_precision<fp32>} : vector<8x8xf32>, vector<8x128xf32>, vector<8x128xf32> -> vector<8x128xf32>
    %202 = arith.addf %191, %201 : vector<8x128xf32>
    %c0_34 = arith.constant 0 : index
    %c0_35 = arith.constant 0 : index
    %203 = vector.load %arg7[%c0_34, %c0_35] : memref<8x1xf32, #tpu.memory_space<vmem>>, vector<8x1xf32>
    %204 = vector.broadcast %203 : vector<8x1xf32> to vector<8x128xf32>
    %205 = arith.mulf %202, %204 : vector<8x128xf32>
    %c0_36 = arith.constant 0 : index
    %c0_37 = arith.constant 0 : index
    %206 = vector.load %arg8[%c0_36, %c0_37] : memref<8x1xf32, #tpu.memory_space<vmem>>, vector<8x1xf32>
    %207 = vector.broadcast %206 : vector<8x1xf32> to vector<8x128xf32>
    %208 = arith.addf %205, %207 : vector<8x128xf32>
    %cst_38 = arith.constant 0.000000e+00 : f32
    %209 = vector.broadcast %cst_38 : f32 to vector<8x128xf32>
    %210 = arith.maximumf %208, %209 : vector<8x128xf32>
    %c0_39 = arith.constant 0 : index
    %c0_40 = arith.constant 0 : index
    %211 = vector.load %arg9[%c0_39, %c0_40] : memref<8x128xf32, #tpu.memory_space<vmem>>, vector<8x128xf32>
    tpu.vector_store %arg9[%c0_39, %c0_40], %210 {strides = array<i32>} : memref<8x128xf32, #tpu.memory_space<vmem>>, vector<8x128xf32>,
    return
  }
  func.func @transform_0(%arg0: i32) -> (i32, i32, i32) {
    %c0_i32 = arith.constant 0 : i32
    %c0_i32_0 = arith.constant 0 : i32
    %c0_i32_1 = arith.constant 0 : i32
    %c0_i32_2 = arith.constant 0 : i32
    return %c0_i32, %c0_i32_0, %c0_i32_1 : i32, i32, i32
  }
  func.func @transform_1(%arg0: i32) -> (i32, i32, i32) {
    %c0_i32 = arith.constant 0 : i32
    %c0_i32_0 = arith.constant 0 : i32
    %c0_i32_1 = arith.constant 0 : i32
    %c0_i32_2 = arith.constant 0 : i32
    return %c0_i32, %c0_i32_0, %c0_i32_1 : i32, i32, i32
  }
  func.func @transform_2(%arg0: i32) -> (i32, i32, i32) {
    %c0_i32 = arith.constant 0 : i32
    %c0_i32_0 = arith.constant 0 : i32
    %c0_i32_1 = arith.constant 0 : i32
    %c0_i32_2 = arith.constant 0 : i32
    return %c0_i32, %c0_i32_0, %c0_i32_1 : i32, i32, i32
  }
  func.func @transform_3(%arg0: i32) -> (i32, i32) {
    %c0_i32 = arith.constant 0 : i32
    %c0_i32_0 = arith.constant 0 : i32
    %c0_i32_1 = arith.constant 0 : i32
    return %c0_i32, %c0_i32_0 : i32, i32
  }
  func.func @transform_4(%arg0: i32) -> (i32, i32) {
    %c0_i32 = arith.constant 0 : i32
    %c0_i32_0 = arith.constant 0 : i32
    %c0_i32_1 = arith.constant 0 : i32
    return %c0_i32, %c0_i32_0 : i32, i32
  }
  func.func @transform_5(%arg0: i32) -> (i32, i32, i32) {
    %c0_i32 = arith.constant 0 : i32
    %c0_i32_0 = arith.constant 0 : i32
    %c0_i32_1 = arith.constant 0 : i32
    %c0_i32_2 = arith.constant 0 : i32
    return %c0_i32, %c0_i32_0, %c0_i32_1 : i32, i32, i32
  }
  func.func @transform_6(%arg0: i32) -> (i32, i32) {
    %c0_i32 = arith.constant 0 : i32
    %c0_i32_0 = arith.constant 0 : i32
    %c0_i32_1 = arith.constant 0 : i32
    return %c0_i32, %c0_i32_0 : i32, i32
  }
  func.func @transform_7(%arg0: i32) -> (i32, i32) {
    %c0_i32 = arith.constant 0 : i32
    %c0_i32_0 = arith.constant 0 : i32
    %c0_i32_1 = arith.constant 0 : i32
    return %c0_i32, %c0_i32_0 : i32, i32
  }
  func.func @transform_8(%arg0: i32) -> (i32, i32) {
    %c0_i32 = arith.constant 0 : i32
    %c0_i32_0 = arith.constant 0 : i32
    %c0_i32_1 = arith.constant 0 : i32
    return %c0_i32, %c0_i32_0 : i32, i32
  }
}

</mosaic_0001>

<bundles_post_ra>
// kernel: down_forward.1
= control target key start
LH: loop header
LB: loop body
LE: loop exit
PB: predicated region body
PF: predicated region fallthrough
CT: control target
= control target key end

     0   :  { %vm33_vm0 = vcmask 1043456   ;;  %v9340_v3 = vmov 0.0   ;;  %vm9341_vm1 = vmmov 0   ;;  %s9342_s13 = smov 8   ;;  %s9344_s14 = smov 9   ;;  %vm81_vm2 = vcmask 31744   ;;  %s9933_s0 = inlined_call_operand.vmem [shape: f32[4,4,128], index: 0, kind: input, shape index: {}]   ;;  %s9934_s2 = inlined_call_operand.vmem [shape: f32[9,8,4], index: 2, kind: input, shape index: {}]   ;;  %s9935_s1 = inlined_call_operand.vmem [shape: f32[9,1,128], index: 1, kind: input, shape index: {}]   ;;  %s9936_s3 = inlined_call_operand.vmem [shape: f32[8,1], index: 3, kind: input, shape index: {}]   ;;  %s9937_s4 = inlined_call_operand.vmem [shape: f32[8,1], index: 4, kind: input, shape index: {}]   ;;  %s9938_s7 = inlined_call_operand.vmem [shape: f32[8,1], index: 7, kind: input, shape index: {}]   ;;  %s9939_s6 = inlined_call_operand.vmem [shape: f32[8,1], index: 6, kind: input, shape index: {}]   ;;  %s9940_s5 = inlined_call_operand.vmem [shape: f32[9,8,8], index: 5, kind: input, shape index: {}]   ;;  %s9941_s8 = inlined_call_operand.vmem [shape: f32[8,128], index: 8, kind: output, shape index: {}]  }
   0x1   :  { %v29_v0 = vld [vmem:[%s9933_s0] sm:$0xf]  ;;  %v30_v1 = vld [vmem:[%s9933_s0 + $0x4] sm:$0xf]  ;;  %v31_v2 = vld [vmem:[%s9933_s0 + $0x8] sm:$0xf]  ;;  %8575 = vmatprep.subr.mxu0 %v9340_v3  ;;  %8577 = vmatprep.mubr.msk.f32.mxu0 %vm9341_vm1, %v9340_v3 }
   0x2   :  { %v32_v4 = vld [vmem:[%s9933_s0 + $0xc] sm:$0xf]  ;;  %v34_v5 = vsel %vm33_vm0, %v29_v0, -inf  ;;  %v35_v6 = vsel %vm33_vm0, %v30_v1, -inf  ;;  %v36_v7 = vsel %vm33_vm0, %v31_v2, -inf  ;;  %8845 = vmatprep.subr.mxu1 %v9340_v3  ;;  %8847 = vmatprep.mubr.msk.f32.mxu1 %vm9341_vm1, %v9340_v3  ;;  %s9343_s0 = smov 7  }
   0x3   :  { %v37_v8 = vsel %vm33_vm0, %v32_v4, -inf  ;;  %v38_v9 = vmax.f32 %v34_v5, %v35_v6  ;;  %s9345_s15 = smov 1   ;;  %v51_v12 = vld [vmem:[%s9934_s2 + $0x8] sm:$0xff]  ;;  %s9346_s18 = smov 127   ;;  %v9437_v17 = vld [vmem:[%s9935_s1 + $0x1] ss:$0 sm:$0xff] }
   0x4   :  { %v39_v10 = vmax.f32 %v36_v7, %v37_v8  ;;  %v83_v13 = vsel %vm81_vm2, %v51_v12, 0  ;;  %v9454_v28 = vld [vmem:[%s9935_s1] ss:$0 sm:$0xff]  ;;  %s9347_s25 = smov 121   ;;  %v9485_v44 = vld [vmem:[%s9935_s1 + $0x2] ss:$0 sm:$0xff] }
   0x5   :  { %v154_v14 = vand.u32 4294901760, %v83_v13  ;;  %v50_v31 = vld [vmem:[%s9934_s2] sm:$0xff]  ;;  %v52_v47 = vld [vmem:[%s9934_s2 + $0x10] sm:$0xff]  ;;  %s9348_s30 = smov 120   ;;  %v53_v63 = vld [vmem:[%s9934_s2 + $0x18] sm:$0xff]  ;;  %s9349_s16 = smov 119  }
   0x6   :  { %v9418_v11 = vmax.f32 %v38_v9, %v39_v10  ;;  %v535_v32 = vsel %vm81_vm2, %v50_v31, 0  ;;  %v997_v48 = vsel %vm81_vm2, %v52_v47, 0  ;;  %v9516_v60 = vld [vmem:[%s9935_s1 + $0x3] ss:$0 sm:$0xff]  ;;  %v1460_v0 = vsel %vm81_vm2, %v53_v63, 0 }
   0x7   :  { %v155_v15 = vsub.f32 %v83_v13, %v154_v14  ;;  %v606_v34 = vand.u32 4294901760, %v535_v32  ;;  %v1068_v50 = vand.u32 4294901760, %v997_v48  ;;  %v1531_v2 = vand.u32 4294901760, %v1460_v0  ;;  %v9606_v47 = vld [vmem:[%s9935_s1 + $0x6] ss:$0 sm:$0xff] }
   0x8   :  { %70 = vrot.lane.b32.xlu0 %v9418_v11, %s9342_s13  ;;  %986 = vrot.lane.b32.xlu1 %v9418_v11, %s9343_s0  ;;  %vm73_vm3 = vcmask 64512  }
   0x9   :  { %v156_v16 = vand.u32 4294901760, %v155_v15  ;;  %v607_v36 = vsub.f32 %v535_v32, %v606_v34  ;;  %v1069_v52 = vsub.f32 %v997_v48, %v1068_v50  ;;  %v1532_v5 = vsub.f32 %v1460_v0, %v1531_v2  ;;  %v4224_v0 = vld [vmem:[%s9936_s3] sm:$0xff] }
   0xb   :  { %v157_v18 = vsub.f32 %v155_v15, %v156_v16  ;;  %v608_v38 = vand.u32 4294901760, %v607_v36  ;;  %v1070_v54 = vand.u32 4294901760, %v1069_v52  ;;  %v1533_v7 = vand.u32 4294901760, %v1532_v5 }
   0xc   :  { %60 = vrot.lane.b32.xlu0 %v9418_v11, %s9344_s14  ;;  %1449 = vrot.lane.b32.xlu1 %v9418_v11, %s9345_s15 }
   0xd   :  { %v158_v22 = vand.u32 4294901760, %v157_v18  ;;  %v609_v40 = vsub.f32 %v607_v36, %v608_v38  ;;  %v1071_v56 = vsub.f32 %v1069_v52, %v1070_v54  ;;  %v1534_v9 = vsub.f32 %v1532_v5, %v1533_v7 }
   0xf   :  { %v610_v42 = vand.u32 4294901760, %v609_v40  ;;  %v1072_v58 = vand.u32 4294901760, %v1071_v56  ;;  %v1535_v12 = vand.u32 4294901760, %v1534_v9 }
  0x10   :  { %2372 = vrot.lane.b32.xlu0 %v9418_v11, %s9346_s18  ;;  %2835 = vrot.lane.b32.xlu1 %v9418_v11, %s9347_s25 }
  0x14   :  { %3298 = vrot.lane.b32.xlu0 %v9418_v11, %s9348_s30  ;;  %3761 = vrot.lane.b32.xlu1 %v9418_v11, %s9349_s16 }
  0x7a   :  { %v71_v19 = vpop.permute.xlu0 %70  ;;  %v987_v45 = vpop.permute.xlu1 %986 }
  0x7b   :  { %v80_v20 = vmul.f32 %v9437_v17, %v71_v19  ;;  %v995_v46 = vmul.f32 %v9485_v44, %v987_v45 }
  0x7d   :  { %v86_v21 = vsel %vm33_vm0, %v80_v20, 0  ;;  %v1000_v49 = vsel %vm33_vm0, %v995_v46, 0 }
  0x7e   :  { %v89_v23 = vand.u32 4294901760, %v86_v21  ;;  %v61_v29 = vpop.permute.xlu0 %60  ;;  %v1003_v51 = vand.u32 4294901760, %v1000_v49  ;;  %v1450_v61 = vpop.permute.xlu1 %1449 }
  0x7f   :  { %v69_v30 = vmul.f32 %v9454_v28, %v61_v29  ;;  %v1458_v62 = vmul.f32 %v9516_v60, %v1450_v61 }
  0x80   :  { %v166_v24 = vsub.f32 %v86_v21, %v89_v23  ;;  %8576 = vmatpush3.msra.mxu0 %v89_v23  ;;  %v1080_v53 = vsub.f32 %v1000_v49, %v1003_v51 }
  0x81   :  { %8578 = vmatmul.mubr.f32.vlgmr.msra.gmra.mrb[0].mxu0 %v158_v22  ;;  %8580 = vmatprep.subr.mxu0 %v9340_v3  ;;  %v538_v33 = vsel %vm33_vm0, %v69_v30, 0  ;;  %v1463_v1 = vsel %vm33_vm0, %v1458_v62, 0  ;;  %v9577_v30 = vld [vmem:[%s9935_s1 + $0x5] ss:$0 sm:$0xff] }
  0x82   :  { %v167_v25 = vand.u32 4294901760, %v166_v24  ;;  %8582 = vmatprep.mubr.msk.f32.mxu0 %vm9341_vm1, %v9340_v3  ;;  %v541_v35 = vand.u32 4294901760, %v538_v33  ;;  %v1081_v55 = vand.u32 4294901760, %v1080_v53  ;;  %v1466_v4 = vand.u32 4294901760, %v1463_v1  ;;  %v2373_v31 = vpop.permute.xlu0 %2372  ;;  %v2836_v48 = vpop.permute.xlu1 %2835 }
  0x83   :  { %v2381_v32 = vmul.f32 %v9577_v30, %v2373_v31  ;;  %v2844_v49 = vmul.f32 %v9606_v47, %v2836_v48 }
  0x84   :  { %v168_v26 = vsub.f32 %v166_v24, %v167_v25  ;;  %v618_v37 = vsub.f32 %v538_v33, %v541_v35  ;;  %v1082_v57 = vsub.f32 %v1080_v53, %v1081_v55  ;;  %v1543_v6 = vsub.f32 %v1463_v1, %v1466_v4  ;;  %v55_v33 = vld [vmem:[%s9934_s2 + $0x28] sm:$0xff]  ;;  %v4231_v1 = vld [vmem:[%s9937_s4] sm:$0xff] }
  0x86   :  { %v169_v27 = vand.u32 4294901760, %v168_v26  ;;  %v619_v39 = vand.u32 4294901760, %v618_v37  ;;  %v1083_v59 = vand.u32 4294901760, %v1082_v57  ;;  %v1544_v8 = vand.u32 4294901760, %v1543_v6 }
  0x88   :  { %8581 = vmatpush3.msra.mxu0 %v169_v27  ;;  %v620_v41 = vsub.f32 %v618_v37, %v619_v39  ;;  %v1545_v10 = vsub.f32 %v1543_v6, %v1544_v8 }
  0x89   :  { %8583 = vmatmul.mubr.f32.vlgmr.msra.gmra.mrb[0].mxu0 %v154_v14  ;;  %8585 = vmatprep.subr.mxu0 %v9340_v3 }
  0x8a   :  { %8586 = vmatpush3.msra.mxu0 %v166_v24  ;;  %8587 = vmatprep.mubr.msk.f32.mxu0 %vm9341_vm1, %v9340_v3  ;;  %v621_v43 = vand.u32 4294901760, %v620_v41  ;;  %v1546_v13 = vand.u32 4294901760, %v1545_v10 }
  0x8b   :  { %8590 = vmatprep.subr.mxu0 %v9340_v3 }
  0x91   :  { %8588 = vmatmul.mubr.f32.vlgmr.msra.gmra.mrb[0].mxu0 %v155_v15 }
  0x92   :  { %8591 = vmatpush3.msra.mxu0 %v89_v23  ;;  %8592 = vmatprep.mubr.msk.f32.mxu0 %vm9341_vm1, %v9340_v3 }
  0x93   :  { %8595 = vmatprep.subr.mxu0 %v9340_v3 }
  0x99   :  { %8593 = vmatmul.mubr.f32.vlgmr.msra.gmra.mrb[0].mxu0 %v156_v16  ;;  %v54_v16 = vld [vmem:[%s9934_s2 + $0x20] sm:$0xff] }
  0x9a   :  { %8596 = vmatpush3.msra.mxu0 %v167_v25  ;;  %8597 = vmatprep.mubr.msk.f32.mxu0 %vm9341_vm1, %v9340_v3  ;;  %v1920_v18 = vsel %vm81_vm2, %v54_v16, 0 }
  0x9b   :  { %8600 = vmatprep.subr.mxu0 %v9340_v3  ;;  %v1991_v20 = vand.u32 4294901760, %v1920_v18 }
  0x9d   :  { %v1992_v22 = vsub.f32 %v1920_v18, %v1991_v20 }
  0xa1   :  { %8598 = vmatmul.mubr.f32.vlgmr.msra.gmra.mrb[0].mxu0 %v154_v14 }
  0xa2   :  { %8601 = vmatpush3.msra.mxu0 %v89_v23  ;;  %8602 = vmatprep.mubr.msk.f32.mxu0 %vm9341_vm1, %v9340_v3  ;;  %v1993_v23 = vand.u32 4294901760, %v1992_v22 }
  0xa3   :  { %8605 = vmatprep.subr.mxu0 %v9340_v3 }
  0xa4   :  { %v1994_v25 = vsub.f32 %v1992_v22, %v1993_v23 }
  0xa6   :  { %v1995_v27 = vand.u32 4294901760, %v1994_v25  ;;  %v58_v25 = vld [vmem:[%s9934_s2 + $0x40] sm:$0xff] }
  0xa9   :  { %8603 = vmatmul.mubr.f32.vlgmr.msra.gmra.mrb[0].mxu0 %v154_v14  ;;  %v9547_v14 = vld [vmem:[%s9935_s1 + $0x4] ss:$0 sm:$0xff] }
  0xaa   :  { %8606 = vmatpush3.msra.mxu0 %v541_v35  ;;  %8607 = vmatprep.mubr.msk.f32.mxu0 %vm9341_vm1, %v9340_v3  ;;  %v1918_v15 = vmul.f32 %v9547_v14, %v9418_v11 }
  0xab   :  { %8610 = vmatprep.subr.mxu0 %v9340_v3 }
  0xac   :  { %v1923_v19 = vsel %vm33_vm0, %v1918_v15, 0 }
  0xad   :  { %v1926_v21 = vand.u32 4294901760, %v1923_v19 }
  0xaf   :  { %v2003_v11 = vsub.f32 %v1923_v19, %v1926_v21 }
  0xb1   :  { %8608 = vmatmul.mubr.f32.vlgmr.msra.gmra.mrb[0].mxu0 %v610_v42  ;;  %v2004_v24 = vand.u32 4294901760, %v2003_v11 }
  0xb2   :  { %8611 = vmatpush3.msra.mxu0 %v621_v43  ;;  %8612 = vmatprep.mubr.msk.f32.mxu0 %vm9341_vm1, %v9340_v3 }
  0xb3   :  { %8615 = vmatprep.subr.mxu0 %v9340_v3  ;;  %v2005_v26 = vsub.f32 %v2003_v11, %v2004_v24 }
  0xb5   :  { %v2006_v29 = vand.u32 4294901760, %v2005_v26  ;;  %v3772_v26 = vsel %vm81_vm2, %v58_v25, 0 }
  0xb9   :  { %8613 = vmatmul.mubr.f32.vlgmr.msra.gmra.mrb[0].mxu0 %v606_v34 }
  0xba   :  { %8616 = vmatpush3.msra.mxu0 %v618_v37  ;;  %8617 = vmatprep.mubr.msk.f32.mxu0 %vm9341_vm1, %v9340_v3 }
  0xbb   :  { %8620 = vmatprep.subr.mxu0 %v9340_v3 }
  0xc1   :  { %8618 = vmatmul.mubr.f32.vlgmr.msra.gmra.mrb[0].mxu0 %v607_v36 }
  0xc2   :  { %8621 = vmatpush3.msra.mxu0 %v541_v35  ;;  %8622 = vmatprep.mubr.msk.f32.mxu0 %vm9341_vm1, %v9340_v3 }
  0xc3   :  { %8625 = vmatprep.subr.mxu0 %v9340_v3 }
  0xc9   :  { %8623 = vmatmul.mubr.f32.vlgmr.msra.gmra.mrb[0].mxu0 %v608_v38 }
  0xca   :  { %8626 = vmatpush3.msra.mxu0 %v619_v39  ;;  %8627 = vmatprep.mubr.msk.f32.mxu0 %vm9341_vm1, %v9340_v3 }
  0xcb   :  { %8630 = vmatprep.subr.mxu0 %v9340_v3 }
  0xd1   :  { %8628 = vmatmul.mubr.f32.vlgmr.msra.gmra.mrb[0].mxu0 %v606_v34 }
  0xd2   :  { %8631 = vmatpush3.msra.mxu0 %v541_v35  ;;  %8632 = vmatprep.mubr.msk.f32.mxu0 %vm9341_vm1, %v9340_v3  ;;  %v2386_v35 = vsel %vm33_vm0, %v2381_v32, 0 }
  0xd3   :  { %8635 = vmatprep.subr.mxu0 %v9340_v3  ;;  %v2389_v37 = vand.u32 4294901760, %v2386_v35 }
  0xd5   :  { %v2466_v39 = vsub.f32 %v2386_v35, %v2389_v37 }
  0xd7   :  { %v2467_v41 = vand.u32 4294901760, %v2466_v39 }
  0xd9   :  { %8633 = vmatmul.mubr.f32.vlgmr.msra.gmra.mrb[0].mxu0 %v606_v34  ;;  %v2383_v34 = vsel %vm81_vm2, %v55_v33, 0  ;;  %v2468_v43 = vsub.f32 %v2466_v39, %v2467_v41 }
  0xda   :  { %8636 = vmatpush3.msra.mxu0 %v1003_v51  ;;  %8637 = vmatprep.mubr.msk.f32.mxu0 %vm9341_vm1, %v9340_v3  ;;  %v2454_v36 = vand.u32 4294901760, %v2383_v34 }
  0xdb   :  { %8640 = vmatprep.subr.mxu0 %v9340_v3  ;;  %v2469_v46 = vand.u32 4294901760, %v2468_v43 }
  0xdc   :  { %v2455_v38 = vsub.f32 %v2383_v34, %v2454_v36 }
  0xde   :  { %v2456_v40 = vand.u32 4294901760, %v2455_v38 }
  0xe0   :  { %v2457_v42 = vsub.f32 %v2455_v38, %v2456_v40 }
  0xe1   :  { %8638 = vmatmul.mubr.f32.vlgmr.msra.gmra.mrb[0].mxu0 %v1072_v58 }
  0xe2   :  { %8641 = vmatpush3.msra.mxu0 %v1083_v59  ;;  %8642 = vmatprep.mubr.msk.f32.mxu0 %vm9341_vm1, %v9340_v3  ;;  %v2458_v45 = vand.u32 4294901760, %v2457_v42 }
  0xe3   :  { %8645 = vmatprep.subr.mxu0 %v9340_v3 }
  0xe9   :  { %8643 = vmatmul.mubr.f32.vlgmr.msra.gmra.mrb[0].mxu0 %v1068_v50 }
  0xea   :  { %8646 = vmatpush3.msra.mxu0 %v1080_v53  ;;  %8647 = vmatprep.mubr.msk.f32.mxu0 %vm9341_vm1, %v9340_v3 }
  0xeb   :  { %8650 = vmatprep.subr.mxu0 %v9340_v3 }
  0xf1   :  { %8648 = vmatmul.mubr.f32.vlgmr.msra.gmra.mrb[0].mxu0 %v1069_v52  ;;  %v2849_v52 = vsel %vm33_vm0, %v2844_v49, 0  ;;  %v8337_v49 = vld [vmem:[%s9938_s7] sm:$0xff] }
  0xf2   :  { %8651 = vmatpush3.msra.mxu0 %v1003_v51  ;;  %8652 = vmatprep.mubr.msk.f32.mxu0 %vm9341_vm1, %v9340_v3 }
  0xf3   :  { %8655 = vmatprep.subr.mxu0 %v9340_v3 }
  0xf9   :  { %8653 = vmatmul.mubr.f32.vlgmr.msra.gmra.mrb[0].mxu0 %v1070_v54  ;;  %v2852_v54 = vand.u32 4294901760, %v2849_v52 }
  0xfa   :  { %8656 = vmatpush3.msra.mxu0 %v1081_v55  ;;  %8657 = vmatprep.mubr.msk.f32.mxu0 %vm9341_vm1, %v9340_v3 }
  0xfb   :  { %8660 = vmatprep.subr.mxu0 %v9340_v3  ;;  %v2929_v56 = vsub.f32 %v2849_v52, %v2852_v54 }
  0xfd   :  { %v2930_v58 = vand.u32 4294901760, %v2929_v56 }
  0xff   :  { %v2931_v61 = vsub.f32 %v2929_v56, %v2930_v58 }
 0x101   :  { %8658 = vmatmul.mubr.f32.vlgmr.msra.gmra.mrb[0].mxu0 %v1068_v50  ;;  %v2932_v63 = vand.u32 4294901760, %v2931_v61 }
 0x102   :  { %8661 = vmatpush3.msra.mxu0 %v1003_v51  ;;  %8662 = vmatprep.mubr.msk.f32.mxu0 %vm9341_vm1, %v9340_v3 }
 0x103   :  { %8665 = vmatprep.subr.mxu0 %v9340_v3 }
 0x109   :  { %8663 = vmatmul.mubr.f32.vlgmr.msra.gmra.mrb[0].mxu0 %v1068_v50  ;;  %v56_v50 = vld [vmem:[%s9934_s2 + $0x30] sm:$0xff] }
 0x10a   :  { %8666 = vmatpush3.msra.mxu0 %v1466_v4  ;;  %8667 = vmatprep.mubr.msk.f32.mxu0 %vm9341_vm1, %v9340_v3  ;;  %v2846_v51 = vsel %vm81_vm2, %v56_v50, 0  ;;  %v8330_v50 = vld [vmem:[%s9939_s6] sm:$0xff] }
 0x10b   :  { %8670 = vmatprep.subr.mxu0 %v9340_v3  ;;  %v2917_v53 = vand.u32 4294901760, %v2846_v51 }
 0x10d   :  { %v2918_v55 = vsub.f32 %v2846_v51, %v2917_v53  ;;  %v4240_v51 = vld [vmem:[%s9940_s5 + $0x8] sm:$0xff] }
 0x10e   :  { %v4258_v52 = vsel %vm73_vm3, %v4240_v51, 0 }
 0x10f   :  { %v2919_v57 = vand.u32 4294901760, %v2918_v55 }
 0x111   :  { %8668 = vmatmul.mubr.f32.vlgmr.msra.gmra.mrb[0].mxu0 %v1535_v12  ;;  %v2920_v59 = vsub.f32 %v2918_v55, %v2919_v57 }
 0x112   :  { %8671 = vmatpush3.msra.mxu0 %v1546_v13  ;;  %8672 = vmatprep.mubr.msk.f32.mxu0 %vm9341_vm1, %v9340_v3 }
 0x113   :  { %8675 = vmatprep.subr.mxu0 %v9340_v3  ;;  %v2921_v62 = vand.u32 4294901760, %v2920_v59 }
 0x119   :  { %8673 = vmatmul.mubr.f32.vlgmr.msra.gmra.mrb[0].mxu0 %v1531_v2 }
 0x11a   :  { %8676 = vmatpush3.msra.mxu0 %v1543_v6  ;;  %8677 = vmatprep.mubr.msk.f32.mxu0 %vm9341_vm1, %v9340_v3 }
 0x11b   :  { %8680 = vmatprep.subr.mxu0 %v9340_v3 }
 0x121   :  { %8678 = vmatmul.mubr.f32.vlgmr.msra.gmra.mrb[0].mxu0 %v1532_v5  ;;  %v3299_v5 = vpop.permute.xlu0 %3298 }
 0x122   :  { %8681 = vmatpush3.msra.mxu0 %v1466_v4  ;;  %8682 = vmatprep.mubr.msk.f32.mxu0 %vm9341_vm1, %v9340_v3 }
 0x123   :  { %8685 = vmatprep.subr.mxu0 %v9340_v3 }
 0x129   :  { %8683 = vmatmul.mubr.f32.vlgmr.msra.gmra.mrb[0].mxu0 %v1533_v7  ;;  %v57_v7 = vld [vmem:[%s9934_s2 + $0x38] sm:$0xff] }
 0x12a   :  { %8686 = vmatpush3.msra.mxu0 %v1544_v8  ;;  %8687 = vmatprep.mubr.msk.f32.mxu0 %vm9341_vm1, %v9340_v3  ;;  %v3309_v8 = vsel %vm81_vm2, %v57_v7, 0 }
 0x12b   :  { %8690 = vmatprep.subr.mxu0 %v9340_v3  ;;  %v3380_v10 = vand.u32 4294901760, %v3309_v8 }
 0x12d   :  { %v3381_v13 = vsub.f32 %v3309_v8, %v3380_v10 }
 0x12f   :  { %v3382_v16 = vand.u32 4294901760, %v3381_v13 }
 0x131   :  { %8688 = vmatmul.mubr.f32.vlgmr.msra.gmra.mrb[0].mxu0 %v1531_v2  ;;  %v3383_v19 = vsub.f32 %v3381_v13, %v3382_v16 }
 0x132   :  { %8691 = vmatpush3.msra.mxu0 %v1466_v4  ;;  %8692 = vmatprep.mubr.msk.f32.mxu0 %vm9341_vm1, %v9340_v3  ;;  %v9641_v4 = vld [vmem:[%s9935_s1 + $0x7] ss:$0 sm:$0xff] }
 0x133   :  { %8695 = vmatprep.subr.mxu0 %v9340_v3  ;;  %v3307_v6 = vmul.f32 %v9641_v4, %v3299_v5 }
 0x135   :  { %v3312_v9 = vsel %vm33_vm0, %v3307_v6, 0 }
 0x136   :  { %v3315_v12 = vand.u32 4294901760, %v3312_v9 }
 0x138   :  { %v3392_v15 = vsub.f32 %v3312_v9, %v3315_v12 }
 0x139   :  { %8693 = vmatmul.mubr.f32.vlgmr.msra.gmra.mrb[0].mxu0 %v1531_v2  ;;  %v9350_v2 = vmov 0  }
 0x13a   :  { %8696 = vmatpush3.msra.mxu0 %v1926_v21  ;;  %8697 = vmatprep.mubr.msk.f32.mxu0 %vm9341_vm1, %v9340_v3  ;;  %v3393_v18 = vand.u32 4294901760, %v3392_v15 }
 0x13b   :  { %8700 = vmatprep.subr.mxu0 %v9340_v3  ;;  %9338 = vset.pattern.permute.xlu0 %v9350_v2 }
 0x13c   :  { %4227 = vperm.xlu0 %9338, %v4224_v0   ;;  %9339 = vset.pattern.permute.xlu1 %v9350_v2 }
 0x13d   :  { %4234 = vperm.xlu1 %9339, %v4231_v1  }
 0x141   :  { %8698 = vmatmul.mubr.f32.vlgmr.msra.gmra.mrb[0].mxu0 %v1995_v27 }
 0x142   :  { %8701 = vmatpush3.msra.mxu0 %v2006_v29  ;;  %8702 = vmatprep.mubr.msk.f32.mxu0 %vm9341_vm1, %v9340_v3  ;;  %v3843_v29 = vand.u32 4294901760, %v3772_v26 }
 0x143   :  { %8705 = vmatprep.subr.mxu0 %v9340_v3 }
 0x144   :  { %v3844_v32 = vsub.f32 %v3772_v26, %v3843_v29 }
 0x146   :  { %v3845_v34 = vand.u32 4294901760, %v3844_v32 }
 0x149   :  { %8703 = vmatmul.mubr.f32.vlgmr.msra.gmra.mrb[0].mxu0 %v1991_v20 }
 0x14a   :  { %8706 = vmatpush3.msra.mxu0 %v2003_v11  ;;  %8707 = vmatprep.mubr.msk.f32.mxu0 %vm9341_vm1, %v9340_v3  ;;  %v9670_v11 = vld [vmem:[%s9935_s1 + $0x8] ss:$0 sm:$0xff] }
 0x14b   :  { %8710 = vmatprep.subr.mxu0 %v9340_v3 }
 0x151   :  { %8708 = vmatmul.mubr.f32.vlgmr.msra.gmra.mrb[0].mxu0 %v1992_v22 }
 0x152   :  { %8711 = vmatpush3.msra.mxu0 %v1926_v21  ;;  %8712 = vmatprep.mubr.msk.f32.mxu0 %vm9341_vm1, %v9340_v3 }
 0x153   :  { %8715 = vmatprep.subr.mxu0 %v9340_v3 }
 0x159   :  { %8713 = vmatmul.mubr.f32.vlgmr.msra.gmra.mrb[0].mxu0 %v1993_v23  ;;  %v3762_v23 = vpop.permute.xlu1 %3761 }
 0x15a   :  { %8716 = vmatpush3.msra.mxu0 %v2004_v24  ;;  %8717 = vmatprep.mubr.msk.f32.mxu0 %vm9341_vm1, %v9340_v3  ;;  %v3770_v24 = vmul.f32 %v9670_v11, %v3762_v23 }
 0x15b   :  { %8720 = vmatprep.subr.mxu0 %v9340_v3 }
 0x15c   :  { %v3775_v27 = vsel %vm33_vm0, %v3770_v24, 0 }
 0x15d   :  { %v3778_v31 = vand.u32 4294901760, %v3775_v27 }
 0x15f   :  { %v3855_v33 = vsub.f32 %v3775_v27, %v3778_v31 }
 0x161   :  { %8718 = vmatmul.mubr.f32.vlgmr.msra.gmra.mrb[0].mxu0 %v1991_v20  ;;  %v3856_v35 = vand.u32 4294901760, %v3855_v33 }
 0x162   :  { %8721 = vmatpush3.msra.mxu0 %v1926_v21  ;;  %8722 = vmatprep.mubr.msk.f32.mxu0 %vm9341_vm1, %v9340_v3  ;;  %v3384_v21 = vand.u32 4294901760, %v3383_v19  ;;  %v4241_v19 = vld [vmem:[%s9940_s5 + $0x10] sm:$0xff] }
 0x163   :  { %8725 = vmatprep.subr.mxu0 %v9340_v3 }
 0x169   :  { %8723 = vmatmul.mubr.f32.vlgmr.msra.gmra.mrb[0].mxu0 %v1991_v20  ;;  %v3394_v20 = vsub.f32 %v3392_v15, %v3393_v18 }
 0x16a   :  { %8726 = vmatpush3.msra.mxu0 %v2389_v37  ;;  %8727 = vmatprep.mubr.msk.f32.mxu0 %vm9341_vm1, %v9340_v3 }
 0x16b   :  { %8730 = vmatprep.subr.mxu0 %v9340_v3  ;;  %v3395_v22 = vand.u32 4294901760, %v3394_v20 }
 0x171   :  { %8728 = vmatmul.mubr.f32.vlgmr.msra.gmra.mrb[0].mxu0 %v2458_v45 }
 0x172   :  { %8731 = vmatpush3.msra.mxu0 %v2469_v46  ;;  %8732 = vmatprep.mubr.msk.f32.mxu0 %vm9341_vm1, %v9340_v3 }
 0x173   :  { %8735 = vmatprep.subr.mxu0 %v9340_v3 }
 0x179   :  { %8733 = vmatmul.mubr.f32.vlgmr.msra.gmra.mrb[0].mxu0 %v2454_v36 }
 0x17a   :  { %8736 = vmatpush3.msra.mxu0 %v2466_v39  ;;  %8737 = vmatprep.mubr.msk.f32.mxu0 %vm9341_vm1, %v9340_v3 }
 0x17b   :  { %8740 = vmatprep.subr.mxu0 %v9340_v3 }
 0x181   :  { %8738 = vmatmul.mubr.f32.vlgmr.msra.gmra.mrb[0].mxu0 %v2455_v38 }
 0x182   :  { %8741 = vmatpush3.msra.mxu0 %v2389_v37  ;;  %8742 = vmatprep.mubr.msk.f32.mxu0 %vm9341_vm1, %v9340_v3 }
 0x183   :  { %8745 = vmatprep.subr.mxu0 %v9340_v3 }
 0x189   :  { %8743 = vmatmul.mubr.f32.vlgmr.msra.gmra.mrb[0].mxu0 %v2456_v40 }
 0x18a   :  { %8746 = vmatpush3.msra.mxu0 %v2467_v41  ;;  %8747 = vmatprep.mubr.msk.f32.mxu0 %vm9341_vm1, %v9340_v3 }
 0x18b   :  { %8750 = vmatprep.subr.mxu0 %v9340_v3 }
 0x191   :  { %8748 = vmatmul.mubr.f32.vlgmr.msra.gmra.mrb[0].mxu0 %v2454_v36 }
 0x192   :  { %8751 = vmatpush3.msra.mxu0 %v2389_v37  ;;  %8752 = vmatprep.mubr.msk.f32.mxu0 %vm9341_vm1, %v9340_v3  ;;  %v3857_v37 = vsub.f32 %v3855_v33, %v3856_v35 }
 0x193   :  { %8755 = vmatprep.subr.mxu0 %v9340_v3 }
 0x194   :  { %v3858_v39 = vand.u32 4294901760, %v3857_v37 }
 0x199   :  { %8753 = vmatmul.mubr.f32.vlgmr.msra.gmra.mrb[0].mxu0 %v2454_v36  ;;  %v3846_v36 = vsub.f32 %v3844_v32, %v3845_v34 }
 0x19a   :  { %8756 = vmatpush3.msra.mxu0 %v2852_v54  ;;  %8757 = vmatprep.mubr.msk.f32.mxu0 %vm9341_vm1, %v9340_v3 }
 0x19b   :  { %8760 = vmatprep.subr.mxu0 %v9340_v3  ;;  %v3847_v38 = vand.u32 4294901760, %v3846_v36 }
 0x1a1   :  { %8758 = vmatmul.mubr.f32.vlgmr.msra.gmra.mrb[0].mxu0 %v2921_v62 }
 0x1a2   :  { %8761 = vmatpush3.msra.mxu0 %v2932_v63  ;;  %8762 = vmatprep.mubr.msk.f32.mxu0 %vm9341_vm1, %v9340_v3 }
 0x1a3   :  { %8765 = vmatprep.subr.mxu0 %v9340_v3 }
 0x1a9   :  { %8763 = vmatmul.mubr.f32.vlgmr.msra.gmra.mrb[0].mxu0 %v2917_v53 }
 0x1aa   :  { %8766 = vmatpush3.msra.mxu0 %v2929_v56  ;;  %8767 = vmatprep.mubr.msk.f32.mxu0 %vm9341_vm1, %v9340_v3 }
 0x1ab   :  { %8770 = vmatprep.subr.mxu0 %v9340_v3 }
 0x1b1   :  { %8768 = vmatmul.mubr.f32.vlgmr.msra.gmra.mrb[0].mxu0 %v2918_v55 }
 0x1b2   :  { %8771 = vmatpush3.msra.mxu0 %v2852_v54  ;;  %8772 = vmatprep.mubr.msk.f32.mxu0 %vm9341_vm1, %v9340_v3 }
 0x1b3   :  { %8775 = vmatprep.subr.mxu0 %v9340_v3 }
 0x1b9   :  { %8773 = vmatmul.mubr.f32.vlgmr.msra.gmra.mrb[0].mxu0 %v2919_v57 }
 0x1ba   :  { %8776 = vmatpush3.msra.mxu0 %v2930_v58  ;;  %8777 = vmatprep.mubr.msk.f32.mxu0 %vm9341_vm1, %v9340_v3 }
 0x1bb   :  { %8780 = vmatprep.subr.mxu0 %v9340_v3  ;;  %v4228_v40 = vpop.permute.xlu0 %4227 }
 0x1bc   :  { %v4235_v42 = vpop.permute.xlu1 %4234 }
 0x1c1   :  { %8778 = vmatmul.mubr.f32.vlgmr.msra.gmra.mrb[0].mxu0 %v2917_v53 }
 0x1c2   :  { %8781 = vmatpush3.msra.mxu0 %v2852_v54  ;;  %8782 = vmatprep.mubr.msk.f32.mxu0 %vm9341_vm1, %v9340_v3 }
 0x1c3   :  { %8785 = vmatprep.subr.mxu0 %v9340_v3 }
 0x1c9   :  { %8783 = vmatmul.mubr.f32.vlgmr.msra.gmra.mrb[0].mxu0 %v2917_v53  ;;  %v4326_v53 = vand.u32 4294901760, %v4258_v52 }
 0x1ca   :  { %8786 = vmatpush3.msra.mxu0 %v3315_v12  ;;  %8787 = vmatprep.mubr.msk.f32.mxu0 %vm9341_vm1, %v9340_v3 }
 0x1cb   :  { %8790 = vmatprep.subr.mxu0 %v9340_v3  ;;  %v4327_v54 = vsub.f32 %v4258_v52, %v4326_v53 }
 0x1cd   :  { %v4328_v55 = vand.u32 4294901760, %v4327_v54 }
 0x1cf   :  { %v4329_v56 = vsub.f32 %v4327_v54, %v4328_v55 }
 0x1d1   :  { %8788 = vmatmul.mubr.f32.vlgmr.msra.gmra.mrb[0].mxu0 %v3384_v21  ;;  %v4330_v59 = vand.u32 4294901760, %v4329_v56  ;;  %v5160_v21 = vsel %vm73_vm3, %v4241_v19, 0 }
 0x1d2   :  { %8791 = vmatpush3.msra.mxu0 %v3395_v22  ;;  %8792 = vmatprep.mubr.msk.f32.mxu0 %vm9341_vm1, %v9340_v3  ;;  %v5228_v23 = vand.u32 4294901760, %v5160_v21 }
 0x1d3   :  { %8795 = vmatprep.subr.mxu0 %v9340_v3 }
 0x1d4   :  { %v5229_v25 = vsub.f32 %v5160_v21, %v5228_v23 }
 0x1d6   :  { %v5230_v27 = vand.u32 4294901760, %v5229_v25 }
 0x1d9   :  { %8793 = vmatmul.mubr.f32.vlgmr.msra.gmra.mrb[0].mxu0 %v3380_v10 }
 0x1da   :  { %8796 = vmatpush3.msra.mxu0 %v3392_v15  ;;  %8797 = vmatprep.mubr.msk.f32.mxu0 %vm9341_vm1, %v9340_v3 }
 0x1db   :  { %8800 = vmatprep.subr.mxu0 %v9340_v3 }
 0x1e1   :  { %8798 = vmatmul.mubr.f32.vlgmr.msra.gmra.mrb[0].mxu0 %v3381_v13 }
 0x1e2   :  { %8801 = vmatpush3.msra.mxu0 %v3315_v12  ;;  %8802 = vmatprep.mubr.msk.f32.mxu0 %vm9341_vm1, %v9340_v3 }
 0x1e3   :  { %8805 = vmatprep.subr.mxu0 %v9340_v3 }
 0x1e9   :  { %8803 = vmatmul.mubr.f32.vlgmr.msra.gmra.mrb[0].mxu0 %v3382_v16 }
 0x1ea   :  { %8806 = vmatpush3.msra.mxu0 %v3393_v18  ;;  %8807 = vmatprep.mubr.msk.f32.mxu0 %vm9341_vm1, %v9340_v3 }
 0x1eb   :  { %8810 = vmatprep.subr.mxu0 %v9340_v3 }
 0x1f1   :  { %8808 = vmatmul.mubr.f32.vlgmr.msra.gmra.mrb[0].mxu0 %v3380_v10 }
 0x1f2   :  { %8811 = vmatpush3.msra.mxu0 %v3315_v12  ;;  %8812 = vmatprep.mubr.msk.f32.mxu0 %vm9341_vm1, %v9340_v3 }
 0x1f3   :  { %8815 = vmatprep.subr.mxu0 %v9340_v3 }
 0x1f9   :  { %8813 = vmatmul.mubr.f32.vlgmr.msra.gmra.mrb[0].mxu0 %v3380_v10 }
 0x1fa   :  { %8816 = vmatpush3.msra.mxu0 %v3778_v31  ;;  %8817 = vmatprep.mubr.msk.f32.mxu0 %vm9341_vm1, %v9340_v3 }
 0x1fb   :  { %8820 = vmatprep.subr.mxu0 %v9340_v3 }
 0x201   :  { %8818 = vmatmul.mubr.f32.vlgmr.msra.gmra.mrb[0].mxu0 %v3847_v38 }
 0x202   :  { %8821 = vmatpush3.msra.mxu0 %v3858_v39  ;;  %8822 = vmatprep.mubr.msk.f32.mxu0 %vm9341_vm1, %v9340_v3 }
 0x203   :  { %8825 = vmatprep.subr.mxu0 %v9340_v3 }
 0x209   :  { %8823 = vmatmul.mubr.f32.vlgmr.msra.gmra.mrb[0].mxu0 %v3843_v29 }
 0x20a   :  { %8826 = vmatpush3.msra.mxu0 %v3855_v33  ;;  %8827 = vmatprep.mubr.msk.f32.mxu0 %vm9341_vm1, %v9340_v3 }
 0x20b   :  { %8830 = vmatprep.subr.mxu0 %v9340_v3 }
 0x211   :  { %8828 = vmatmul.mubr.f32.vlgmr.msra.gmra.mrb[0].mxu0 %v3844_v32 }
 0x212   :  { %8831 = vmatpush3.msra.mxu0 %v3778_v31  ;;  %8832 = vmatprep.mubr.msk.f32.mxu0 %vm9341_vm1, %v9340_v3 }
 0x213   :  { %8835 = vmatprep.subr.mxu0 %v9340_v3 }
 0x219   :  { %8833 = vmatmul.mubr.f32.vlgmr.msra.gmra.mrb[0].mxu0 %v3845_v34  ;;  %v4242_v34 = vld [vmem:[%s9940_s5 + $0x18] sm:$0xff] }
 0x21a   :  { %8836 = vmatpush3.msra.mxu0 %v3856_v35  ;;  %8837 = vmatprep.mubr.msk.f32.mxu0 %vm9341_vm1, %v9340_v3  ;;  %v5614_v36 = vsel %vm73_vm3, %v4242_v34, 0 }
 0x21b   :  { %8840 = vmatprep.subr.mxu0 %v9340_v3  ;;  %v5682_v38 = vand.u32 4294901760, %v5614_v36 }
 0x221   :  { %8838 = vmatmul.mubr.f32.vlgmr.msra.gmra.mrb[0].mxu0 %v3843_v29 }
 0x222   :  { %8841 = vmatpush3.msra.mxu0 %v3778_v31  ;;  %8842 = vmatprep.mubr.msk.f32.mxu0 %vm9341_vm1, %v9340_v3  ;;  %v5231_v31 = vsub.f32 %v5229_v25, %v5230_v27 }
 0x224   :  { %v5232_v32 = vand.u32 4294901760, %v5231_v31 }
 0x229   :  { %8843 = vmatmul.mubr.f32.vlgmr.msra.gmra.mrb[0].mxu0 %v3843_v29 }
 0x2fc   :  { %v4219_v41 = vpop.f32.mrb[0].mxu0 }
 0x2fd   :  { %v4230_v43 = vmul.f32 %v4228_v40, %v4219_v41  ;;  %v8844_v45 = vpop.f32.mrb[1].mxu0  ;;  %v5683_v40 = vsub.f32 %v5614_v36, %v5682_v38 }
 0x2ff   :  { %v4237_v46 = vadd.f32 %v4235_v42, %v4230_v43  ;;  %v5684_v42 = vand.u32 4294901760, %v5683_v40 }
 0x301   :  { %v9701_v48 = vmax.f32 %v4237_v46, 0.0  ;;  %v5685_v45 = vsub.f32 %v5683_v40, %v5684_v42 }
 0x303   :  { %4249 = vrot.lane.b32.xlu0 %v9701_v48, %s9344_s14  ;;  %4253 = vrot.lane.b32.xlu1 %v9701_v48, %s9342_s13  ;;  %v5686_v46 = vand.u32 4294901760, %v5685_v45  ;;  %v6063_v52 = vmul.f32 %v9547_v14, %v9701_v48 }
 0x307   :  { %5609 = vrot.lane.b32.xlu0 %v9701_v48, %s9345_s15  ;;  %5155 = vrot.lane.b32.xlu1 %v9701_v48, %s9343_s0 }
 0x30b   :  { %6968 = vrot.lane.b32.xlu0 %v9701_v48, %s9347_s25  ;;  %6514 = vrot.lane.b32.xlu1 %v9701_v48, %s9346_s18 }
 0x30f   :  { %7876 = vrot.lane.b32.xlu0 %v9701_v48, %s9349_s16  ;;  %7422 = vrot.lane.b32.xlu1 %v9701_v48, %s9348_s30 }
 0x313   :  { %8340 = vperm.xlu0 %9338, %v8337_v49   ;;  %8333 = vperm.xlu1 %9339, %v8330_v50   ;;  %v4243_v50 = vld [vmem:[%s9940_s5 + $0x20] sm:$0xff] }
 0x314   :  { %v6065_v51 = vsel %vm73_vm3, %v4243_v50, 0 }
 0x375   :  { %v4254_v57 = vpop.permute.xlu1 %4253  ;;  %v4250_v2 = vpop.permute.xlu0 %4249 }
 0x376   :  { %v4256_v58 = vmul.f32 %v9437_v17, %v4254_v57  ;;  %v4239_v17 = vld [vmem:[%s9940_s5] sm:$0xff]  ;;  %v4252_v6 = vmul.f32 %v9454_v28, %v4250_v2 }
 0x377   :  { %v4707_v5 = vsel %vm73_vm3, %v4239_v17, 0 }
 0x378   :  { %v4261_v61 = vand.u32 4294901760, %v4256_v58  ;;  %v4775_v7 = vand.u32 4294901760, %v4707_v5  ;;  %v4710_v8 = vand.u32 4294901760, %v4252_v6 }
 0x379   :  { %v5156_v20 = vpop.permute.xlu1 %5155  ;;  %v5610_v35 = vpop.permute.xlu0 %5609 }
 0x37a   :  { %v4338_v62 = vsub.f32 %v4256_v58, %v4261_v61  ;;  %8846 = vmatpush3.msra.mxu1 %v4261_v61  ;;  %v4776_v9 = vsub.f32 %v4707_v5, %v4775_v7  ;;  %v4787_v10 = vsub.f32 %v4252_v6, %v4710_v8  ;;  %v5158_v22 = vmul.f32 %v9485_v44, %v5156_v20 }
 0x37b   :  { %8848 = vmatmul.mubr.f32.vlgmr.msra.gmra.mrb[0].mxu1 %v4330_v59  ;;  %8850 = vmatprep.subr.mxu1 %v9340_v3  ;;  %v5612_v37 = vmul.f32 %v9516_v60, %v5610_v35 }
 0x37c   :  { %v4339_v63 = vand.u32 4294901760, %v4338_v62  ;;  %8852 = vmatprep.mubr.msk.f32.mxu1 %vm9341_vm1, %v9340_v3  ;;  %v4777_v12 = vand.u32 4294901760, %v4776_v9  ;;  %v4788_v13 = vand.u32 4294901760, %v4787_v10  ;;  %v5163_v24 = vand.u32 4294901760, %v5158_v22 }
 0x37d   :  { %v5617_v39 = vand.u32 4294901760, %v5612_v37 }
 0x37e   :  { %v4340_v0 = vsub.f32 %v4338_v62, %v4339_v63  ;;  %v4778_v15 = vsub.f32 %v4776_v9, %v4777_v12  ;;  %v4789_v28 = vsub.f32 %v4787_v10, %v4788_v13  ;;  %v5240_v26 = vsub.f32 %v5158_v22, %v5163_v24 }
 0x37f   :  { %v5694_v41 = vsub.f32 %v5612_v37, %v5617_v39 }
 0x380   :  { %v4341_v1 = vand.u32 4294901760, %v4340_v0  ;;  %v4779_v16 = vand.u32 4294901760, %v4778_v15  ;;  %v4790_v18 = vand.u32 4294901760, %v4789_v28  ;;  %v5241_v29 = vand.u32 4294901760, %v5240_v26  ;;  %v6969_v15 = vpop.permute.xlu0 %6968 }
 0x381   :  { %v5695_v43 = vand.u32 4294901760, %v5694_v41 }
 0x382   :  { %8851 = vmatpush3.msra.mxu1 %v4341_v1  ;;  %v5242_v44 = vsub.f32 %v5240_v26, %v5241_v29 }
 0x383   :  { %8853 = vmatmul.mubr.f32.vlgmr.msra.gmra.mrb[0].mxu1 %v4326_v53  ;;  %8855 = vmatprep.subr.mxu1 %v9340_v3  ;;  %v5696_v60 = vsub.f32 %v5694_v41, %v5695_v43 }
 0x384   :  { %8856 = vmatpush3.msra.mxu1 %v4338_v62  ;;  %8857 = vmatprep.mubr.msk.f32.mxu1 %vm9341_vm1, %v9340_v3  ;;  %v5243_v33 = vand.u32 4294901760, %v5242_v44  ;;  %v4244_v62 = vld [vmem:[%s9940_s5 + $0x28] sm:$0xff] }
 0x385   :  { %8860 = vmatprep.subr.mxu1 %v9340_v3  ;;  %v5697_v49 = vand.u32 4294901760, %v5696_v60  ;;  %v6519_v0 = vsel %vm73_vm3, %v4244_v62, 0 }
 0x386   :  { %v6587_v17 = vand.u32 4294901760, %v6519_v0 }
 0x388   :  { %v6588_v5 = vsub.f32 %v6519_v0, %v6587_v17 }
 0x38b   :  { %8858 = vmatmul.mubr.f32.vlgmr.msra.gmra.mrb[0].mxu1 %v4327_v54  ;;  %v6068_v54 = vand.u32 4294901760, %v6063_v52 }
 0x38c   :  { %8861 = vmatpush3.msra.mxu1 %v4261_v61  ;;  %8862 = vmatprep.mubr.msk.f32.mxu1 %vm9341_vm1, %v9340_v3 }
 0x38d   :  { %8865 = vmatprep.subr.mxu1 %v9340_v3  ;;  %v6145_v56 = vsub.f32 %v6063_v52, %v6068_v54 }
 0x38f   :  { %v6146_v58 = vand.u32 4294901760, %v6145_v56 }
 0x391   :  { %v6147_v14 = vsub.f32 %v6145_v56, %v6146_v58 }
 0x393   :  { %8863 = vmatmul.mubr.f32.vlgmr.msra.gmra.mrb[0].mxu1 %v4328_v55 }
 0x394   :  { %8866 = vmatpush3.msra.mxu1 %v4339_v63  ;;  %8867 = vmatprep.mubr.msk.f32.mxu1 %vm9341_vm1, %v9340_v3  ;;  %v6515_v63 = vpop.permute.xlu1 %6514 }
 0x395   :  { %8870 = vmatprep.subr.mxu1 %v9340_v3  ;;  %v6517_v1 = vmul.f32 %v9577_v30, %v6515_v63 }
 0x397   :  { %v6522_v2 = vand.u32 4294901760, %v6517_v1 }
 0x399   :  { %v6599_v6 = vsub.f32 %v6517_v1, %v6522_v2 }
 0x39b   :  { %8868 = vmatmul.mubr.f32.vlgmr.msra.gmra.mrb[0].mxu1 %v4326_v53 }
 0x39c   :  { %8871 = vmatpush3.msra.mxu1 %v4261_v61  ;;  %8872 = vmatprep.mubr.msk.f32.mxu1 %vm9341_vm1, %v9340_v3  ;;  %v6148_v61 = vand.u32 4294901760, %v6147_v14 }
 0x39d   :  { %8875 = vmatprep.subr.mxu1 %v9340_v3 }
 0x3a3   :  { %8873 = vmatmul.mubr.f32.vlgmr.msra.gmra.mrb[0].mxu1 %v4326_v53  ;;  %v6133_v53 = vand.u32 4294901760, %v6065_v51 }
 0x3a4   :  { %8876 = vmatpush3.msra.mxu1 %v4710_v8  ;;  %8877 = vmatprep.mubr.msk.f32.mxu1 %vm9341_vm1, %v9340_v3 }
 0x3a5   :  { %8880 = vmatprep.subr.mxu1 %v9340_v3  ;;  %v6134_v55 = vsub.f32 %v6065_v51, %v6133_v53 }
 0x3a7   :  { %v6135_v57 = vand.u32 4294901760, %v6134_v55 }
 0x3a9   :  { %v6136_v59 = vsub.f32 %v6134_v55, %v6135_v57 }
 0x3ab   :  { %8878 = vmatmul.mubr.f32.vlgmr.msra.gmra.mrb[0].mxu1 %v4779_v16  ;;  %v6137_v48 = vand.u32 4294901760, %v6136_v59  ;;  %v6971_v16 = vmul.f32 %v9606_v47, %v6969_v15 }
 0x3ac   :  { %8881 = vmatpush3.msra.mxu1 %v4790_v18  ;;  %8882 = vmatprep.mubr.msk.f32.mxu1 %vm9341_vm1, %v9340_v3 }
 0x3ad   :  { %8885 = vmatprep.subr.mxu1 %v9340_v3  ;;  %v6976_v19 = vand.u32 4294901760, %v6971_v16 }
 0x3af   :  { %v7053_v21 = vsub.f32 %v6971_v16, %v6976_v19 }
 0x3b3   :  { %8883 = vmatmul.mubr.f32.vlgmr.msra.gmra.mrb[0].mxu1 %v4775_v7 }
 0x3b4   :  { %8886 = vmatpush3.msra.mxu1 %v4787_v10  ;;  %8887 = vmatprep.mubr.msk.f32.mxu1 %vm9341_vm1, %v9340_v3 }
 0x3b5   :  { %8890 = vmatprep.subr.mxu1 %v9340_v3 }
 0x3bb   :  { %8888 = vmatmul.mubr.f32.vlgmr.msra.gmra.mrb[0].mxu1 %v4776_v9 }
 0x3bc   :  { %8891 = vmatpush3.msra.mxu1 %v4710_v8  ;;  %8892 = vmatprep.mubr.msk.f32.mxu1 %vm9341_vm1, %v9340_v3 }
 0x3bd   :  { %8895 = vmatprep.subr.mxu1 %v9340_v3 }
 0x3c3   :  { %8893 = vmatmul.mubr.f32.vlgmr.msra.gmra.mrb[0].mxu1 %v4777_v12 }
 0x3c4   :  { %8896 = vmatpush3.msra.mxu1 %v4788_v13  ;;  %8897 = vmatprep.mubr.msk.f32.mxu1 %vm9341_vm1, %v9340_v3  ;;  %v4245_v13 = vld [vmem:[%s9940_s5 + $0x30] sm:$0xff] }
 0x3c5   :  { %8900 = vmatprep.subr.mxu1 %v9340_v3  ;;  %v6973_v28 = vsel %vm73_vm3, %v4245_v13, 0 }
 0x3c6   :  { %v7041_v18 = vand.u32 4294901760, %v6973_v28 }
 0x3c8   :  { %v7042_v20 = vsub.f32 %v6973_v28, %v7041_v18 }
 0x3ca   :  { %v7043_v22 = vand.u32 4294901760, %v7042_v20 }
 0x3cb   :  { %8898 = vmatmul.mubr.f32.vlgmr.msra.gmra.mrb[0].mxu1 %v4775_v7 }
 0x3cc   :  { %8901 = vmatpush3.msra.mxu1 %v4710_v8  ;;  %8902 = vmatprep.mubr.msk.f32.mxu1 %vm9341_vm1, %v9340_v3  ;;  %v6600_v8 = vand.u32 4294901760, %v6599_v6 }
 0x3cd   :  { %8905 = vmatprep.subr.mxu1 %v9340_v3 }
 0x3ce   :  { %v6601_v30 = vsub.f32 %v6599_v6, %v6600_v8 }
 0x3d0   :  { %v6602_v12 = vand.u32 4294901760, %v6601_v30 }
 0x3d3   :  { %8903 = vmatmul.mubr.f32.vlgmr.msra.gmra.mrb[0].mxu1 %v4775_v7  ;;  %v6589_v7 = vand.u32 4294901760, %v6588_v5 }
 0x3d4   :  { %8906 = vmatpush3.msra.mxu1 %v5163_v24  ;;  %8907 = vmatprep.mubr.msk.f32.mxu1 %vm9341_vm1, %v9340_v3 }
 0x3d5   :  { %8910 = vmatprep.subr.mxu1 %v9340_v3  ;;  %v6590_v9 = vsub.f32 %v6588_v5, %v6589_v7 }
 0x3d7   :  { %v6591_v10 = vand.u32 4294901760, %v6590_v9 }
 0x3db   :  { %8908 = vmatmul.mubr.f32.vlgmr.msra.gmra.mrb[0].mxu1 %v5232_v32 }
 0x3dc   :  { %8911 = vmatpush3.msra.mxu1 %v5243_v33  ;;  %8912 = vmatprep.mubr.msk.f32.mxu1 %vm9341_vm1, %v9340_v3 }
 0x3dd   :  { %8915 = vmatprep.subr.mxu1 %v9340_v3 }
 0x3e3   :  { %8913 = vmatmul.mubr.f32.vlgmr.msra.gmra.mrb[0].mxu1 %v5228_v23 }
 0x3e4   :  { %8916 = vmatpush3.msra.mxu1 %v5240_v26  ;;  %8917 = vmatprep.mubr.msk.f32.mxu1 %vm9341_vm1, %v9340_v3 }
 0x3e5   :  { %8920 = vmatprep.subr.mxu1 %v9340_v3 }
 0x3eb   :  { %8918 = vmatmul.mubr.f32.vlgmr.msra.gmra.mrb[0].mxu1 %v5229_v25 }
 0x3ec   :  { %8921 = vmatpush3.msra.mxu1 %v5163_v24  ;;  %8922 = vmatprep.mubr.msk.f32.mxu1 %vm9341_vm1, %v9340_v3 }
 0x3ed   :  { %8925 = vmatprep.subr.mxu1 %v9340_v3 }
 0x3f3   :  { %8923 = vmatmul.mubr.f32.vlgmr.msra.gmra.mrb[0].mxu1 %v5230_v27  ;;  %v4246_v27 = vld [vmem:[%s9940_s5 + $0x38] sm:$0xff] }
 0x3f4   :  { %8926 = vmatpush3.msra.mxu1 %v5241_v29  ;;  %8927 = vmatprep.mubr.msk.f32.mxu1 %vm9341_vm1, %v9340_v3  ;;  %v7423_v29 = vpop.permute.xlu1 %7422  ;;  %v7427_v31 = vsel %vm73_vm3, %v4246_v27, 0 }
 0x3f5   :  { %8930 = vmatprep.subr.mxu1 %v9340_v3  ;;  %v7425_v44 = vmul.f32 %v9641_v4, %v7423_v29  ;;  %v7495_v32 = vand.u32 4294901760, %v7427_v31 }
 0x3f7   :  { %v7430_v33 = vand.u32 4294901760, %v7425_v44  ;;  %v7496_v34 = vsub.f32 %v7427_v31, %v7495_v32 }
 0x3f9   :  { %v7507_v35 = vsub.f32 %v7425_v44, %v7430_v33  ;;  %v7497_v36 = vand.u32 4294901760, %v7496_v34 }
 0x3fb   :  { %8928 = vmatmul.mubr.f32.vlgmr.msra.gmra.mrb[0].mxu1 %v5228_v23  ;;  %v7508_v37 = vand.u32 4294901760, %v7507_v35 }
 0x3fc   :  { %8931 = vmatpush3.msra.mxu1 %v5163_v24  ;;  %8932 = vmatprep.mubr.msk.f32.mxu1 %vm9341_vm1, %v9340_v3  ;;  %v7044_v24 = vsub.f32 %v7042_v20, %v7043_v22 }
 0x3fd   :  { %8935 = vmatprep.subr.mxu1 %v9340_v3  ;;  %v7509_v4 = vsub.f32 %v7507_v35, %v7508_v37 }
 0x3fe   :  { %v7045_v25 = vand.u32 4294901760, %v7044_v24 }
 0x403   :  { %8933 = vmatmul.mubr.f32.vlgmr.msra.gmra.mrb[0].mxu1 %v5228_v23  ;;  %v7054_v23 = vand.u32 4294901760, %v7053_v21 }
 0x404   :  { %8936 = vmatpush3.msra.mxu1 %v5617_v39  ;;  %8937 = vmatprep.mubr.msk.f32.mxu1 %vm9341_vm1, %v9340_v3 }
 0x405   :  { %8940 = vmatprep.subr.mxu1 %v9340_v3  ;;  %v7055_v47 = vsub.f32 %v7053_v21, %v7054_v23 }
 0x407   :  { %v7056_v26 = vand.u32 4294901760, %v7055_v47 }
 0x40b   :  { %8938 = vmatmul.mubr.f32.vlgmr.msra.gmra.mrb[0].mxu1 %v5686_v46 }
 0x40c   :  { %8941 = vmatpush3.msra.mxu1 %v5697_v49  ;;  %8942 = vmatprep.mubr.msk.f32.mxu1 %vm9341_vm1, %v9340_v3 }
 0x40d   :  { %8945 = vmatprep.subr.mxu1 %v9340_v3 }
 0x413   :  { %8943 = vmatmul.mubr.f32.vlgmr.msra.gmra.mrb[0].mxu1 %v5682_v38 }
 0x414   :  { %8946 = vmatpush3.msra.mxu1 %v5694_v41  ;;  %8947 = vmatprep.mubr.msk.f32.mxu1 %vm9341_vm1, %v9340_v3  ;;  %v4247_v41 = vld [vmem:[%s9940_s5 + $0x40] sm:$0xff] }
 0x415   :  { %8950 = vmatprep.subr.mxu1 %v9340_v3 }
 0x41b   :  { %8948 = vmatmul.mubr.f32.vlgmr.msra.gmra.mrb[0].mxu1 %v5683_v40  ;;  %v7510_v40 = vand.u32 4294901760, %v7509_v4 }
 0x41c   :  { %8951 = vmatpush3.msra.mxu1 %v5617_v39  ;;  %8952 = vmatprep.mubr.msk.f32.mxu1 %vm9341_vm1, %v9340_v3 }
 0x41d   :  { %8955 = vmatprep.subr.mxu1 %v9340_v3 }
 0x423   :  { %8953 = vmatmul.mubr.f32.vlgmr.msra.gmra.mrb[0].mxu1 %v5684_v42  ;;  %v7877_v42 = vpop.permute.xlu0 %7876 }
 0x424   :  { %8956 = vmatpush3.msra.mxu1 %v5695_v43  ;;  %8957 = vmatprep.mubr.msk.f32.mxu1 %vm9341_vm1, %v9340_v3  ;;  %v7881_v43 = vsel %vm73_vm3, %v4247_v41, 0  ;;  %v7879_v45 = vmul.f32 %v9670_v11, %v7877_v42 }
 0x425   :  { %8960 = vmatprep.subr.mxu1 %v9340_v3  ;;  %v7949_v60 = vand.u32 4294901760, %v7881_v43 }
 0x426   :  { %v7884_v46 = vand.u32 4294901760, %v7879_v45 }
 0x427   :  { %v7950_v49 = vsub.f32 %v7881_v43, %v7949_v60  ;;  %v8341_v14 = vpop.permute.xlu0 %8340 }
 0x428   :  { %v7961_v50 = vsub.f32 %v7879_v45, %v7884_v46 }
 0x429   :  { %v7951_v51 = vand.u32 4294901760, %v7950_v49 }
 0x42a   :  { %v7962_v52 = vand.u32 4294901760, %v7961_v50 }
 0x42b   :  { %8958 = vmatmul.mubr.f32.vlgmr.msra.gmra.mrb[0].mxu1 %v5682_v38 }
 0x42c   :  { %8961 = vmatpush3.msra.mxu1 %v5617_v39  ;;  %8962 = vmatprep.mubr.msk.f32.mxu1 %vm9341_vm1, %v9340_v3  ;;  %v7963_v11 = vsub.f32 %v7961_v50, %v7962_v52 }
 0x42d   :  { %8965 = vmatprep.subr.mxu1 %v9340_v3 }
 0x433   :  { %8963 = vmatmul.mubr.f32.vlgmr.msra.gmra.mrb[0].mxu1 %v5682_v38  ;;  %v7498_v38 = vsub.f32 %v7496_v34, %v7497_v36 }
 0x434   :  { %8966 = vmatpush3.msra.mxu1 %v6068_v54  ;;  %8967 = vmatprep.mubr.msk.f32.mxu1 %vm9341_vm1, %v9340_v3 }
 0x435   :  { %8970 = vmatprep.subr.mxu1 %v9340_v3  ;;  %v7499_v39 = vand.u32 4294901760, %v7498_v38 }
 0x43b   :  { %8968 = vmatmul.mubr.f32.vlgmr.msra.gmra.mrb[0].mxu1 %v6137_v48 }
 0x43c   :  { %8971 = vmatpush3.msra.mxu1 %v6148_v61  ;;  %8972 = vmatprep.mubr.msk.f32.mxu1 %vm9341_vm1, %v9340_v3 }
 0x43d   :  { %8975 = vmatprep.subr.mxu1 %v9340_v3 }
 0x443   :  { %8973 = vmatmul.mubr.f32.vlgmr.msra.gmra.mrb[0].mxu1 %v6133_v53 }
 0x444   :  { %8976 = vmatpush3.msra.mxu1 %v6145_v56  ;;  %8977 = vmatprep.mubr.msk.f32.mxu1 %vm9341_vm1, %v9340_v3  ;;  %v8334_v56 = vpop.permute.xlu1 %8333 }
 0x445   :  { %8980 = vmatprep.subr.mxu1 %v9340_v3 }
 0x44b   :  { %8978 = vmatmul.mubr.f32.vlgmr.msra.gmra.mrb[0].mxu1 %v6134_v55  ;;  %v7964_v55 = vand.u32 4294901760, %v7963_v11 }
 0x44c   :  { %8981 = vmatpush3.msra.mxu1 %v6068_v54  ;;  %8982 = vmatprep.mubr.msk.f32.mxu1 %vm9341_vm1, %v9340_v3 }
 0x44d   :  { %8985 = vmatprep.subr.mxu1 %v9340_v3 }
 0x453   :  { %8983 = vmatmul.mubr.f32.vlgmr.msra.gmra.mrb[0].mxu1 %v6135_v57 }
 0x454   :  { %8986 = vmatpush3.msra.mxu1 %v6146_v58  ;;  %8987 = vmatprep.mubr.msk.f32.mxu1 %vm9341_vm1, %v9340_v3 }
 0x455   :  { %8990 = vmatprep.subr.mxu1 %v9340_v3 }
 0x45b   :  { %8988 = vmatmul.mubr.f32.vlgmr.msra.gmra.mrb[0].mxu1 %v6133_v53 }
 0x45c   :  { %8991 = vmatpush3.msra.mxu1 %v6068_v54  ;;  %8992 = vmatprep.mubr.msk.f32.mxu1 %vm9341_vm1, %v9340_v3 }
 0x45d   :  { %8995 = vmatprep.subr.mxu1 %v9340_v3 }
 0x463   :  { %8993 = vmatmul.mubr.f32.vlgmr.msra.gmra.mrb[0].mxu1 %v6133_v53  ;;  %v7952_v53 = vsub.f32 %v7950_v49, %v7951_v51 }
 0x464   :  { %8996 = vmatpush3.msra.mxu1 %v6522_v2  ;;  %8997 = vmatprep.mubr.msk.f32.mxu1 %vm9341_vm1, %v9340_v3 }
 0x465   :  { %9000 = vmatprep.subr.mxu1 %v9340_v3  ;;  %v7953_v54 = vand.u32 4294901760, %v7952_v53 }
 0x46b   :  { %8998 = vmatmul.mubr.f32.vlgmr.msra.gmra.mrb[0].mxu1 %v6591_v10 }
 0x46c   :  { %9001 = vmatpush3.msra.mxu1 %v6602_v12  ;;  %9002 = vmatprep.mubr.msk.f32.mxu1 %vm9341_vm1, %v9340_v3 }
 0x46d   :  { %9005 = vmatprep.subr.mxu1 %v9340_v3 }
 0x473   :  { %9003 = vmatmul.mubr.f32.vlgmr.msra.gmra.mrb[0].mxu1 %v6587_v17 }
 0x474   :  { %9006 = vmatpush3.msra.mxu1 %v6599_v6  ;;  %9007 = vmatprep.mubr.msk.f32.mxu1 %vm9341_vm1, %v9340_v3 }
 0x475   :  { %9010 = vmatprep.subr.mxu1 %v9340_v3 }
 0x47b   :  { %9008 = vmatmul.mubr.f32.vlgmr.msra.gmra.mrb[0].mxu1 %v6588_v5 }
 0x47c   :  { %9011 = vmatpush3.msra.mxu1 %v6522_v2  ;;  %9012 = vmatprep.mubr.msk.f32.mxu1 %vm9341_vm1, %v9340_v3 }
 0x47d   :  { %9015 = vmatprep.subr.mxu1 %v9340_v3 }
 0x483   :  { %9013 = vmatmul.mubr.f32.vlgmr.msra.gmra.mrb[0].mxu1 %v6589_v7 }
 0x484   :  { %9016 = vmatpush3.msra.mxu1 %v6600_v8  ;;  %9017 = vmatprep.mubr.msk.f32.mxu1 %vm9341_vm1, %v9340_v3 }
 0x485   :  { %9020 = vmatprep.subr.mxu1 %v9340_v3 }
 0x48b   :  { %9018 = vmatmul.mubr.f32.vlgmr.msra.gmra.mrb[0].mxu1 %v6587_v17 }
 0x48c   :  { %9021 = vmatpush3.msra.mxu1 %v6522_v2  ;;  %9022 = vmatprep.mubr.msk.f32.mxu1 %vm9341_vm1, %v9340_v3 }
 0x48d   :  { %9025 = vmatprep.subr.mxu1 %v9340_v3 }
 0x493   :  { %9023 = vmatmul.mubr.f32.vlgmr.msra.gmra.mrb[0].mxu1 %v6587_v17 }
 0x494   :  { %9026 = vmatpush3.msra.mxu1 %v6976_v19  ;;  %9027 = vmatprep.mubr.msk.f32.mxu1 %vm9341_vm1, %v9340_v3 }
 0x495   :  { %9030 = vmatprep.subr.mxu1 %v9340_v3 }
 0x49b   :  { %9028 = vmatmul.mubr.f32.vlgmr.msra.gmra.mrb[0].mxu1 %v7045_v25 }
 0x49c   :  { %9031 = vmatpush3.msra.mxu1 %v7056_v26  ;;  %9032 = vmatprep.mubr.msk.f32.mxu1 %vm9341_vm1, %v9340_v3 }
 0x49d   :  { %9035 = vmatprep.subr.mxu1 %v9340_v3 }
 0x4a3   :  { %9033 = vmatmul.mubr.f32.vlgmr.msra.gmra.mrb[0].mxu1 %v7041_v18 }
 0x4a4   :  { %9036 = vmatpush3.msra.mxu1 %v7053_v21  ;;  %9037 = vmatprep.mubr.msk.f32.mxu1 %vm9341_vm1, %v9340_v3 }
 0x4a5   :  { %9040 = vmatprep.subr.mxu1 %v9340_v3 }
 0x4ab   :  { %9038 = vmatmul.mubr.f32.vlgmr.msra.gmra.mrb[0].mxu1 %v7042_v20 }
 0x4ac   :  { %9041 = vmatpush3.msra.mxu1 %v6976_v19  ;;  %9042 = vmatprep.mubr.msk.f32.mxu1 %vm9341_vm1, %v9340_v3 }
 0x4ad   :  { %9045 = vmatprep.subr.mxu1 %v9340_v3 }
 0x4b3   :  { %9043 = vmatmul.mubr.f32.vlgmr.msra.gmra.mrb[0].mxu1 %v7043_v22 }
 0x4b4   :  { %9046 = vmatpush3.msra.mxu1 %v7054_v23  ;;  %9047 = vmatprep.mubr.msk.f32.mxu1 %vm9341_vm1, %v9340_v3 }
 0x4b5   :  { %9050 = vmatprep.subr.mxu1 %v9340_v3 }
 0x4bb   :  { %9048 = vmatmul.mubr.f32.vlgmr.msra.gmra.mrb[0].mxu1 %v7041_v18 }
 0x4bc   :  { %9051 = vmatpush3.msra.mxu1 %v6976_v19  ;;  %9052 = vmatprep.mubr.msk.f32.mxu1 %vm9341_vm1, %v9340_v3 }
 0x4bd   :  { %9055 = vmatprep.subr.mxu1 %v9340_v3 }
 0x4c3   :  { %9053 = vmatmul.mubr.f32.vlgmr.msra.gmra.mrb[0].mxu1 %v7041_v18 }
 0x4c4   :  { %9056 = vmatpush3.msra.mxu1 %v7430_v33  ;;  %9057 = vmatprep.mubr.msk.f32.mxu1 %vm9341_vm1, %v9340_v3 }
 0x4c5   :  { %9060 = vmatprep.subr.mxu1 %v9340_v3 }
 0x4cb   :  { %9058 = vmatmul.mubr.f32.vlgmr.msra.gmra.mrb[0].mxu1 %v7499_v39 }
 0x4cc   :  { %9061 = vmatpush3.msra.mxu1 %v7510_v40  ;;  %9062 = vmatprep.mubr.msk.f32.mxu1 %vm9341_vm1, %v9340_v3 }
 0x4cd   :  { %9065 = vmatprep.subr.mxu1 %v9340_v3 }
 0x4d3   :  { %9063 = vmatmul.mubr.f32.vlgmr.msra.gmra.mrb[0].mxu1 %v7495_v32 }
 0x4d4   :  { %9066 = vmatpush3.msra.mxu1 %v7507_v35  ;;  %9067 = vmatprep.mubr.msk.f32.mxu1 %vm9341_vm1, %v9340_v3 }
 0x4d5   :  { %9070 = vmatprep.subr.mxu1 %v9340_v3 }
 0x4db   :  { %9068 = vmatmul.mubr.f32.vlgmr.msra.gmra.mrb[0].mxu1 %v7496_v34 }
 0x4dc   :  { %9071 = vmatpush3.msra.mxu1 %v7430_v33  ;;  %9072 = vmatprep.mubr.msk.f32.mxu1 %vm9341_vm1, %v9340_v3 }
 0x4dd   :  { %9075 = vmatprep.subr.mxu1 %v9340_v3 }
 0x4e3   :  { %9073 = vmatmul.mubr.f32.vlgmr.msra.gmra.mrb[0].mxu1 %v7497_v36 }
 0x4e4   :  { %9076 = vmatpush3.msra.mxu1 %v7508_v37  ;;  %9077 = vmatprep.mubr.msk.f32.mxu1 %vm9341_vm1, %v9340_v3 }
 0x4e5   :  { %9080 = vmatprep.subr.mxu1 %v9340_v3 }
 0x4eb   :  { %9078 = vmatmul.mubr.f32.vlgmr.msra.gmra.mrb[0].mxu1 %v7495_v32 }
 0x4ec   :  { %9081 = vmatpush3.msra.mxu1 %v7430_v33  ;;  %9082 = vmatprep.mubr.msk.f32.mxu1 %vm9341_vm1, %v9340_v3 }
 0x4ed   :  { %9085 = vmatprep.subr.mxu1 %v9340_v3 }
 0x4f3   :  { %9083 = vmatmul.mubr.f32.vlgmr.msra.gmra.mrb[0].mxu1 %v7495_v32 }
 0x4f4   :  { %9086 = vmatpush3.msra.mxu1 %v7884_v46  ;;  %9087 = vmatprep.mubr.msk.f32.mxu1 %vm9341_vm1, %v9340_v3 }
 0x4f5   :  { %9090 = vmatprep.subr.mxu1 %v9340_v3 }
 0x4fb   :  { %9088 = vmatmul.mubr.f32.vlgmr.msra.gmra.mrb[0].mxu1 %v7953_v54 }
 0x4fc   :  { %9091 = vmatpush3.msra.mxu1 %v7964_v55  ;;  %9092 = vmatprep.mubr.msk.f32.mxu1 %vm9341_vm1, %v9340_v3 }
 0x4fd   :  { %9095 = vmatprep.subr.mxu1 %v9340_v3 }
 0x503   :  { %9093 = vmatmul.mubr.f32.vlgmr.msra.gmra.mrb[0].mxu1 %v7949_v60 }
 0x504   :  { %9096 = vmatpush3.msra.mxu1 %v7961_v50  ;;  %9097 = vmatprep.mubr.msk.f32.mxu1 %vm9341_vm1, %v9340_v3 }
 0x505   :  { %9100 = vmatprep.subr.mxu1 %v9340_v3 }
 0x50b   :  { %9098 = vmatmul.mubr.f32.vlgmr.msra.gmra.mrb[0].mxu1 %v7950_v49 }
 0x50c   :  { %9101 = vmatpush3.msra.mxu1 %v7884_v46  ;;  %9102 = vmatprep.mubr.msk.f32.mxu1 %vm9341_vm1, %v9340_v3 }
 0x50d   :  { %9105 = vmatprep.subr.mxu1 %v9340_v3 }
 0x513   :  { %9103 = vmatmul.mubr.f32.vlgmr.msra.gmra.mrb[0].mxu1 %v7951_v51 }
 0x514   :  { %9106 = vmatpush3.msra.mxu1 %v7962_v52  ;;  %9107 = vmatprep.mubr.msk.f32.mxu1 %vm9341_vm1, %v9340_v3 }
 0x515   :  { %9110 = vmatprep.subr.mxu1 %v9340_v3 }
 0x51b   :  { %9108 = vmatmul.mubr.f32.vlgmr.msra.gmra.mrb[0].mxu1 %v7949_v60 }
 0x51c   :  { %9111 = vmatpush3.msra.mxu1 %v7884_v46  ;;  %9112 = vmatprep.mubr.msk.f32.mxu1 %vm9341_vm1, %v9340_v3 }
 0x523   :  { %9113 = vmatmul.mubr.f32.vlgmr.msra.gmra.mrb[0].mxu1 %v7949_v60 }
 0x5f6   :  { %v8325_v57 = vpop.f32.mrb[0].mxu1 }
 0x5f7   :  { %v8336_v58 = vmul.f32 %v8334_v56, %v8325_v57  ;;  %v9114_v59 = vpop.f32.mrb[1].mxu1 }
 0x5f9   :  { %v8343_v48 = vadd.f32 %v8341_v14, %v8336_v58 }
 0x5fb   :  { %v8344_v61 = vmax.f32 %v8343_v48, 0.0 }
 0x5fd   :  { %8345 = vst [vmem:[%s9941_s8] sm:$0xff] %v8344_v61 }

</bundles_post_ra>
